<compile_context>
chip_gen: v7x
topology: tpu7x:2x2x1
jax: 0.10.0
libtpu: 0.0.40
codegen_flags: <defaults>
</compile_context>

<pallas_src>
import functools

import jax
import jax.numpy as jnp
from jax import lax
from jax.experimental import pallas as pl
from jax.experimental.pallas import tpu as pltpu

EMB = 64
EPS = 1e-5
F32 = jnp.float32


def _round_up(x, m):
    return ((x + m - 1) // m) * m


# ---------------------------------------------------------------------------
# pallas_call helper for the small single-block kernels (full arrays in VMEM).
# ---------------------------------------------------------------------------
def _vmem_spec():
    return pl.BlockSpec(memory_space=pltpu.MemorySpace.VMEM)


def _call(kernel, out_shape, *args):
    return pl.pallas_call(
        kernel,
        out_shape=out_shape,
        in_specs=[_vmem_spec() for _ in args],
        out_specs=_vmem_spec(),
    )(*args)


# ---------------------------------------------------------------------------
# In-kernel helpers
# ---------------------------------------------------------------------------
def _layernorm(x, gamma, beta):
    mu = jnp.mean(x, axis=-1, keepdims=True)
    var = jnp.mean((x - mu) ** 2, axis=-1, keepdims=True)
    return (x - mu) * lax.rsqrt(var + EPS) * gamma + beta


def _dot(a, b):
    return jnp.dot(a, b, preferred_element_type=jnp.float32)


# ---------------------------------------------------------------------------
# Kernels
# ---------------------------------------------------------------------------
def embed_kernel(x_ref, g_ref, be_ref, w1_ref, b1_ref, w2_ref, b2_ref, o_ref):
    # LayerNorm -> Linear -> ReLU -> Linear -> ReLU
    h = _layernorm(x_ref[...], g_ref[...], be_ref[...])
    h = jnp.maximum(_dot(h, w1_ref[...]) + b1_ref[...], 0.0)
    h = jnp.maximum(_dot(h, w2_ref[...]) + b2_ref[...], 0.0)
    o_ref[...] = h


def conv_kernel(tgt_ref, hij_ref, right_ref,
                wlr_ref, bl_ref, lng_ref, lnb_ref, wf_ref, bf_ref,
                png_ref, pnb_ref, w1a_ref, w1b_ref, b1_ref, w2_ref, b2_ref,
                o_ref, acc_ref):
    # Fused BipartiteGraphConvolution: message MLP + 'add' aggregation over edge
    # chunks (grid axis 0) + post_conv LayerNorm + output MLP epilogue.
    k = pl.program_id(0)

    @pl.when(k == 0)
    def _init():
        acc_ref[...] = jnp.zeros_like(acc_ref)

    # --- per-edge messages: K=128 fused matmul (edge term folded into bl_eff) ---
    pre = _dot(hij_ref[...], wlr_ref[...]) + bl_ref[...]
    h = jnp.maximum(_layernorm(pre, lng_ref[...], lnb_ref[...]), 0.0)
    msg = _dot(h, wf_ref[...]) + bf_ref[...]

    # --- scatter-add via in-kernel one-hot (built per chunk, never in HBM) ---
    nr = acc_ref.shape[0]
    te = msg.shape[0]
    rows = lax.broadcasted_iota(jnp.int32, (nr, te), 0)
    onehot = (tgt_ref[...] == rows).astype(jnp.float32)  # padded edges: tgt == -1
    acc_ref[...] += _dot(onehot, msg)

    # --- epilogue: LayerNorm + output MLP (w1 split avoids the concat repack) ---
    @pl.when(k == pl.num_programs(0) - 1)
    def _fin():
        a = _layernorm(acc_ref[...], png_ref[...], pnb_ref[...])
        hh = jnp.maximum(
            _dot(a, w1a_ref[...]) + _dot(right_ref[...], w1b_ref[...]) + b1_ref[...],
            0.0)
        o_ref[...] = _dot(hh, w2_ref[...]) + b2_ref[...]


def literals_kernel(xp_ref, a_ref, b_ref, o_ref):
    # LiteralsMessage on pair-packed [n/2, 128] layout:
    # flip(rows 2i <-> 2i+1) == lane roll by 64.
    xp = xp_ref[...]
    flipped = pltpu.roll(xp, EMB, axis=1)
    o_ref[...] = jnp.maximum(a_ref[...] * xp + b_ref[...] * flipped, 0.0)


def literals_final_kernel(xp_ref, a_ref, b_ref, w1_ref, b1_ref, w2_ref, o_ref):
    # second LiteralsMessage + join_literals (via row-permuted w1) + output MLP.
    xp = xp_ref[...]
    flipped = pltpu.roll(xp, EMB, axis=1)
    lit = jnp.maximum(a_ref[...] * xp + b_ref[...] * flipped, 0.0)
    h = jnp.maximum(_dot(lit, w1_ref[...]) + b1_ref[...], 0.0)
    o_ref[...] = _dot(h, w2_ref[...])  # no bias; lane-padded 128-wide output slab


# ---------------------------------------------------------------------------
# Parameter init (deterministic, synthetic). Linear weights stored [in, out].
# ---------------------------------------------------------------------------
def _init_linear(key, din, dout, bias=True):
    kw, kb = jax.random.split(key)
    w = jax.random.normal(kw, (din, dout), F32) * 0.1
    b = jax.random.normal(kb, (1, dout), F32) * 0.1 if bias else None
    return w, b


def _init_conv(key, edge_beta=0.0):
    ks = jax.random.split(key, 6)
    wl, bl = _init_linear(ks[0], EMB, EMB)
    we, _ = _init_linear(ks[1], 1, EMB, bias=False)
    wr, _ = _init_linear(ks[2], EMB, EMB, bias=False)
    wf, bf = _init_linear(ks[3], EMB, EMB)
    w1, b1 = _init_linear(ks[4], 2 * EMB, EMB)
    w2, b2 = _init_linear(ks[5], EMB, EMB)
    return dict(
        # x_i @ wl + x_j @ wr as one K=128 matmul against (hi || hj)
        wlr=jnp.concatenate([wl, wr], axis=0),
        # edge LayerNorm(1)(e) == beta exactly -> constant, folded into the bias
        bl_eff=bl + edge_beta * we,
        lng=jnp.ones((1, EMB), F32), lnb=jnp.zeros((1, EMB), F32),
        wf=wf, bf=bf,
        png=jnp.ones((1, EMB), F32), pnb=jnp.zeros((1, EMB), F32),
        # cat([LN(agg), right]) @ w1  ==  LN(agg) @ w1a + right @ w1b
        w1a=w1[:EMB], w1b=w1[EMB:], b1=b1,
        w2=w2, b2=b2,
    )


def _init_embed(key, din):
    k1, k2 = jax.random.split(key)
    w1, b1 = _init_linear(k1, din, EMB)
    w2, b2 = _init_linear(k2, EMB, EMB)
    return dict(g=jnp.ones((1, din), F32), b=jnp.zeros((1, din), F32),
                w1=w1, b1=b1, w2=w2, b2=b2)


def init_params(key):
    ks = jax.random.split(key, 10)
    edge_beta = 0.0  # PyTorch LayerNorm default beta init

    ll1_a = jax.random.normal(ks[4], (1, EMB), F32)
    ll1_b = jax.random.normal(ks[5], (1, EMB), F32)
    ll2_a = jax.random.normal(ks[4], (1, EMB), F32) * 0.5 + 0.1
    ll2_b = jax.random.normal(ks[5], (1, EMB), F32) * 0.5 - 0.1

    out_w1, out_b1 = _init_linear(ks[8], 2 * EMB, 2 * EMB)
    out_w2, _ = _init_linear(ks[9], 2 * EMB, 3, bias=False)
    # join_literals interleaves the two literals' features; the kernel keeps the
    # pair-packed (concatenated) layout, so permute w1's rows accordingly.
    perm = jnp.concatenate([2 * jnp.arange(EMB), 2 * jnp.arange(EMB) + 1])
    out_w1p = out_w1[perm]
    # pad the 3-wide head to a lane-dense 128-wide slab (sliced in the wrapper)
    out_w2p = jnp.pad(out_w2, ((0, 0), (0, 2 * EMB - 3)))

    return dict(
        cons_emb=_init_embed(ks[0], 4),
        var_emb=_init_embed(ks[1], 6),
        conv_v_to_c=_init_conv(ks[2], edge_beta),
        conv_c_to_v=_init_conv(ks[3], edge_beta),
        ll1_a2=jnp.concatenate([ll1_a, ll1_a], axis=-1),
        ll1_b2=jnp.concatenate([ll1_b, ll1_b], axis=-1),
        conv_v_to_c2=_init_conv(ks[6], edge_beta),
        conv_c_to_v2=_init_conv(ks[7], edge_beta),
        ll2_a2=jnp.concatenate([ll2_a, ll2_a], axis=-1),
        ll2_b2=jnp.concatenate([ll2_b, ll2_b], axis=-1),
        out_w1p=out_w1p, out_b1=out_b1, out_w2p=out_w2p,
    )


# ---------------------------------------------------------------------------
# Module wrappers (gathers / padding in plain JAX, compute in Pallas kernels)
# ---------------------------------------------------------------------------
def embed(p, x):
    n = x.shape[0]
    return _call(embed_kernel, jax.ShapeDtypeStruct((n, EMB), F32),
                 x, p["g"], p["b"], p["w1"], p["b1"], p["w2"], p["b2"])


def bipartite_conv(p, left, edge_idx, right, *, chunk=512):
    # PyG MessagePassing('add'), source->target:
    #   x_j = left[edge_idx[0]] (source), x_i = right[edge_idx[1]] (target)
    E = int(edge_idx.shape[1])
    NR = int(right.shape[0])
    NR_pad = _round_up(NR, 8)
    chunk = min(chunk, _round_up(max(E, 1), 128))
    E_pad = _round_up(max(E, 1), chunk)
    n_chunks = E_pad // chunk

    src, tgt = edge_idx[0], edge_idx[1]
    # gather + concat in glue -> single lane-dense [E, 128] operand (hi || hj)
    hij = jnp.concatenate([jnp.take(right, tgt, axis=0),
                           jnp.take(left, src, axis=0)], axis=-1)
    hij = jnp.pad(hij, ((0, E_pad - E), (0, 0)))
    tgt_p = jnp.pad(tgt.astype(jnp.int32), (0, E_pad - E),
                    constant_values=-1).reshape(1, E_pad)
    right_p = jnp.pad(right, ((0, NR_pad - NR), (0, 0)))

    res = lambda k: (0, 0)  # resident (single-block) specs
    out = pl.pallas_call(
        conv_kernel,
        out_shape=jax.ShapeDtypeStruct((NR_pad, EMB), F32),
        grid=(n_chunks,),
        in_specs=[
            pl.BlockSpec((1, chunk), lambda k: (0, k)),        # tgt indices
            pl.BlockSpec((chunk, 2 * EMB), lambda k: (k, 0)),  # gathered hi||hj
            pl.BlockSpec((NR_pad, EMB), res),                  # right feats
            pl.BlockSpec((2 * EMB, EMB), res),                 # wlr
            pl.BlockSpec((1, EMB), res),                       # bl_eff
            pl.BlockSpec((1, EMB), res),                       # lng
            pl.BlockSpec((1, EMB), res),                       # lnb
            pl.BlockSpec((EMB, EMB), res),                     # wf
            pl.BlockSpec((1, EMB), res),                       # bf
            pl.BlockSpec((1, EMB), res),                       # png
            pl.BlockSpec((1, EMB), res),                       # pnb
            pl.BlockSpec((EMB, EMB), res),                     # w1a
            pl.BlockSpec((EMB, EMB), res),                     # w1b
            pl.BlockSpec((1, EMB), res),                       # b1
            pl.BlockSpec((EMB, EMB), res),                     # w2
            pl.BlockSpec((1, EMB), res),                       # b2
        ],
        out_specs=pl.BlockSpec((NR_pad, EMB), res),
        scratch_shapes=[pltpu.VMEM((NR_pad, EMB), F32)],
        compiler_params=pltpu.CompilerParams(dimension_semantics=("arbitrary",)),
    )(tgt_p, hij, right_p,
      p["wlr"], p["bl_eff"], p["lng"], p["lnb"], p["wf"], p["bf"],
      p["png"], p["pnb"], p["w1a"], p["w1b"], p["b1"], p["w2"], p["b2"])
    return out[:NR]


def literals_message(a2, b2, v):
    two_n, k = v.shape
    assert two_n % 2 == 0, "literal rows must come in adjacent pairs"
    vp = v.reshape(two_n // 2, 2 * k)        # contiguous reshape (pair-packed)
    outp = _call(literals_kernel, jax.ShapeDtypeStruct(vp.shape, F32), vp, a2, b2)
    return outp.reshape(two_n, k)


def forward(params, constraint_features, edge_indices, edge_features,
            variable_features):
    # edge_embedding == LayerNorm(1): output is exactly beta (variance == 0), a
    # per-edge constant, folded into each conv's bl_eff -- identical arithmetic
    # to the reference module, so edge_features' values never affect the output.
    del edge_features
    rev = jnp.stack([edge_indices[1], edge_indices[0]], axis=0)

    c = embed(params["cons_emb"], constraint_features)
    v = embed(params["var_emb"], variable_features)

    c = bipartite_conv(params["conv_v_to_c"], v, rev, c)
    v = bipartite_conv(params["conv_c_to_v"], c, edge_indices, v)
    v = literals_message(params["ll1_a2"], params["ll1_b2"], v)

    c = bipartite_conv(params["conv_v_to_c2"], v, rev, c)
    v = bipartite_conv(params["conv_c_to_v2"], c, edge_indices, v)

    # second LiteralsMessage + join_literals + final output MLP, fused.
    two_n = v.shape[0]
    assert two_n % 2 == 0
    vp = v.reshape(two_n // 2, 2 * EMB)
    out128 = _call(literals_final_kernel,
                   jax.ShapeDtypeStruct((two_n // 2, 2 * EMB), F32),
                   vp, params["ll2_a2"], params["ll2_b2"],
                   params["out_w1p"], params["out_b1"], params["out_w2p"])
    return out128[:, :3]  # lane-dense slab in the kernel, slice to 3 outputs here


# ---------------------------------------------------------------------------
if __name__ == "__main__":
    key = jax.random.PRNGKey(0)
    kp, k1, k2, k3, k4, k5 = jax.random.split(key, 6)

    params = init_params(kp)

    n_cons, n_vars, n_edges = 8, 8, 16  # n_vars must be even (literal pairs)
    constraint_features = jax.random.normal(k1, (n_cons, 4), F32)
    variable_features = jax.random.normal(k2, (n_vars, 6), F32)
    edge_features = jax.random.normal(k3, (n_edges, 1), F32)
    edge_indices = jnp.stack([
        jax.random.randint(k4, (n_edges,), 0, n_cons),
        jax.random.randint(k5, (n_edges,), 0, n_vars),
    ], axis=0).astype(jnp.int32)

    fwd = jax.jit(functools.partial(forward, params))
    out = fwd(constraint_features, edge_indices, edge_features,
              variable_features)
    out = jax.block_until_ready(out)

    assert out.shape == (n_vars // 2, 3), out.shape
    assert jnp.all(jnp.isfinite(out))
    print("KERNEL_OK")
</pallas_src>

<mosaic_0001>
module attributes {stable_mosaic.version = 11 : i64} {
  func.func @embed_kernel(%arg0: memref<8x6xf32, #tpu.memory_space<vmem>>, %arg1: memref<1x6xf32, #tpu.memory_space<vmem>>, %arg2: memref<1x6xf32, #tpu.memory_space<vmem>>, %arg3: memref<6x64xf32, #tpu.memory_space<vmem>>, %arg4: memref<1x64xf32, #tpu.memory_space<vmem>>, %arg5: memref<64x64xf32, #tpu.memory_space<vmem>>, %arg6: memref<1x64xf32, #tpu.memory_space<vmem>>, %arg7: memref<8x64xf32, #tpu.memory_space<vmem>>) attributes {dimension_semantics = [], scalar_prefetch = 0 : i64, scratch_operands = 0 : i64, tpu.core_type = #tpu.core_type<tc>} {
    %c0 = arith.constant 0 : index
    %c0_0 = arith.constant 0 : index
    %0 = vector.load %arg0[%c0, %c0_0] : memref<8x6xf32, #tpu.memory_space<vmem>>, vector<8x6xf32>
    %c0_1 = arith.constant 0 : index
    %c0_2 = arith.constant 0 : index
    %1 = vector.load %arg1[%c0_1, %c0_2] : memref<1x6xf32, #tpu.memory_space<vmem>>, vector<1x6xf32>
    %c0_3 = arith.constant 0 : index
    %c0_4 = arith.constant 0 : index
    %2 = vector.load %arg2[%c0_3, %c0_4] : memref<1x6xf32, #tpu.memory_space<vmem>>, vector<1x6xf32>
    %cst = arith.constant dense<0.000000e+00> : vector<8xf32>
    %3 = vector.multi_reduction <add>, %0, %cst [1] : vector<8x6xf32> to vector<8xf32>
    %4 = vector.shape_cast %3 : vector<8xf32> to vector<8x1xf32>
    %cst_5 = arith.constant 6.000000e+00 : f32
    %5 = vector.broadcast %cst_5 : f32 to vector<8x1xf32>
    %6 = arith.divf %4, %5 : vector<8x1xf32>
    %7 = vector.broadcast %6 : vector<8x1xf32> to vector<8x6xf32>
    %8 = arith.subf %0, %7 : vector<8x6xf32>
    %9 = arith.mulf %8, %8 : vector<8x6xf32>
    %cst_6 = arith.constant dense<0.000000e+00> : vector<8xf32>
    %10 = vector.multi_reduction <add>, %9, %cst_6 [1] : vector<8x6xf32> to vector<8xf32>
    %11 = vector.shape_cast %10 : vector<8xf32> to vector<8x1xf32>
    %cst_7 = arith.constant 6.000000e+00 : f32
    %12 = vector.broadcast %cst_7 : f32 to vector<8x1xf32>
    %13 = arith.divf %11, %12 : vector<8x1xf32>
    %14 = vector.broadcast %6 : vector<8x1xf32> to vector<8x6xf32>
    %15 = arith.subf %0, %14 : vector<8x6xf32>
    %cst_8 = arith.constant 9.99999974E-6 : f32
    %16 = vector.broadcast %cst_8 : f32 to vector<8x1xf32>
    %17 = arith.addf %13, %16 : vector<8x1xf32>
    %18 = math.rsqrt %17 : vector<8x1xf32>
    %19 = vector.broadcast %18 : vector<8x1xf32> to vector<8x6xf32>
    %20 = arith.mulf %15, %19 : vector<8x6xf32>
    %21 = vector.broadcast %1 : vector<1x6xf32> to vector<8x6xf32>
    %22 = arith.mulf %20, %21 : vector<8x6xf32>
    %23 = vector.broadcast %2 : vector<1x6xf32> to vector<8x6xf32>
    %24 = arith.addf %22, %23 : vector<8x6xf32>
    %c0_9 = arith.constant 0 : index
    %c0_10 = arith.constant 0 : index
    %25 = vector.load %arg3[%c0_9, %c0_10] : memref<6x64xf32, #tpu.memory_space<vmem>>, vector<6x64xf32>
    %cst_11 = arith.constant dense<0.000000e+00> : vector<8x64xf32>
    %26 = tpu.matmul %24, %25, %cst_11 {dimension_numbers = #tpu.dot_dimension_numbers<[1], [0], [0], [1], [0, 0, 1, 1], [], []>} : vector<8x6xf32>, vector<6x64xf32>, vector<8x64xf32> -> vector<8x64xf32>
    %c0_12 = arith.constant 0 : index
    %c0_13 = arith.constant 0 : index
    %27 = vector.load %arg4[%c0_12, %c0_13] : memref<1x64xf32, #tpu.memory_space<vmem>>, vector<1x64xf32>
    %28 = vector.broadcast %27 : vector<1x64xf32> to vector<8x64xf32>
    %29 = arith.addf %26, %28 : vector<8x64xf32>
    %cst_14 = arith.constant 0.000000e+00 : f32
    %30 = vector.broadcast %cst_14 : f32 to vector<8x64xf32>
    %31 = arith.maximumf %29, %30 : vector<8x64xf32>
    %c0_15 = arith.constant 0 : index
    %c0_16 = arith.constant 0 : index
    %32 = vector.load %arg5[%c0_15, %c0_16] : memref<64x64xf32, #tpu.memory_space<vmem>>, vector<64x64xf32>
    %cst_17 = arith.constant dense<0.000000e+00> : vector<8x64xf32>
    %33 = tpu.matmul %31, %32, %cst_17 {dimension_numbers = #tpu.dot_dimension_numbers<[1], [0], [0], [1], [0, 0, 1, 1], [], []>} : vector<8x64xf32>, vector<64x64xf32>, vector<8x64xf32> -> vector<8x64xf32>
    %c0_18 = arith.constant 0 : index
    %c0_19 = arith.constant 0 : index
    %34 = vector.load %arg6[%c0_18, %c0_19] : memref<1x64xf32, #tpu.memory_space<vmem>>, vector<1x64xf32>
    %35 = vector.broadcast %34 : vector<1x64xf32> to vector<8x64xf32>
    %36 = arith.addf %33, %35 : vector<8x64xf32>
    %cst_20 = arith.constant 0.000000e+00 : f32
    %37 = vector.broadcast %cst_20 : f32 to vector<8x64xf32>
    %38 = arith.maximumf %36, %37 : vector<8x64xf32>
    %c0_21 = arith.constant 0 : index
    %c0_22 = arith.constant 0 : index
    %39 = vector.load %arg7[%c0_21, %c0_22] : memref<8x64xf32, #tpu.memory_space<vmem>>, vector<8x64xf32>
    tpu.vector_store %arg7[%c0_21, %c0_22], %38 {strides = array<i32>} : memref<8x64xf32, #tpu.memory_space<vmem>>, vector<8x64xf32>,
    return
  }
}

module attributes {stable_mosaic.version = 11 : i64} {
  func.func @embed_kernel(%arg0: memref<8x4xf32, #tpu.memory_space<vmem>>, %arg1: memref<1x4xf32, #tpu.memory_space<vmem>>, %arg2: memref<1x4xf32, #tpu.memory_space<vmem>>, %arg3: memref<4x64xf32, #tpu.memory_space<vmem>>, %arg4: memref<1x64xf32, #tpu.memory_space<vmem>>, %arg5: memref<64x64xf32, #tpu.memory_space<vmem>>, %arg6: memref<1x64xf32, #tpu.memory_space<vmem>>, %arg7: memref<8x64xf32, #tpu.memory_space<vmem>>) attributes {dimension_semantics = [], scalar_prefetch = 0 : i64, scratch_operands = 0 : i64, tpu.core_type = #tpu.core_type<tc>} {
    %c0 = arith.constant 0 : index
    %c0_0 = arith.constant 0 : index
    %0 = vector.load %arg0[%c0, %c0_0] : memref<8x4xf32, #tpu.memory_space<vmem>>, vector<8x4xf32>
    %c0_1 = arith.constant 0 : index
    %c0_2 = arith.constant 0 : index
    %1 = vector.load %arg1[%c0_1, %c0_2] : memref<1x4xf32, #tpu.memory_space<vmem>>, vector<1x4xf32>
    %c0_3 = arith.constant 0 : index
    %c0_4 = arith.constant 0 : index
    %2 = vector.load %arg2[%c0_3, %c0_4] : memref<1x4xf32, #tpu.memory_space<vmem>>, vector<1x4xf32>
    %cst = arith.constant dense<0.000000e+00> : vector<8xf32>
    %3 = vector.multi_reduction <add>, %0, %cst [1] : vector<8x4xf32> to vector<8xf32>
    %4 = vector.shape_cast %3 : vector<8xf32> to vector<8x1xf32>
    %cst_5 = arith.constant 4.000000e+00 : f32
    %5 = vector.broadcast %cst_5 : f32 to vector<8x1xf32>
    %6 = arith.divf %4, %5 : vector<8x1xf32>
    %7 = vector.broadcast %6 : vector<8x1xf32> to vector<8x4xf32>
    %8 = arith.subf %0, %7 : vector<8x4xf32>
    %9 = arith.mulf %8, %8 : vector<8x4xf32>
    %cst_6 = arith.constant dense<0.000000e+00> : vector<8xf32>
    %10 = vector.multi_reduction <add>, %9, %cst_6 [1] : vector<8x4xf32> to vector<8xf32>
    %11 = vector.shape_cast %10 : vector<8xf32> to vector<8x1xf32>
    %cst_7 = arith.constant 4.000000e+00 : f32
    %12 = vector.broadcast %cst_7 : f32 to vector<8x1xf32>
    %13 = arith.divf %11, %12 : vector<8x1xf32>
    %14 = vector.broadcast %6 : vector<8x1xf32> to vector<8x4xf32>
    %15 = arith.subf %0, %14 : vector<8x4xf32>
    %cst_8 = arith.constant 9.99999974E-6 : f32
    %16 = vector.broadcast %cst_8 : f32 to vector<8x1xf32>
    %17 = arith.addf %13, %16 : vector<8x1xf32>
    %18 = math.rsqrt %17 : vector<8x1xf32>
    %19 = vector.broadcast %18 : vector<8x1xf32> to vector<8x4xf32>
    %20 = arith.mulf %15, %19 : vector<8x4xf32>
    %21 = vector.broadcast %1 : vector<1x4xf32> to vector<8x4xf32>
    %22 = arith.mulf %20, %21 : vector<8x4xf32>
    %23 = vector.broadcast %2 : vector<1x4xf32> to vector<8x4xf32>
    %24 = arith.addf %22, %23 : vector<8x4xf32>
    %c0_9 = arith.constant 0 : index
    %c0_10 = arith.constant 0 : index
    %25 = vector.load %arg3[%c0_9, %c0_10] : memref<4x64xf32, #tpu.memory_space<vmem>>, vector<4x64xf32>
    %cst_11 = arith.constant dense<0.000000e+00> : vector<8x64xf32>
    %26 = tpu.matmul %24, %25, %cst_11 {dimension_numbers = #tpu.dot_dimension_numbers<[1], [0], [0], [1], [0, 0, 1, 1], [], []>} : vector<8x4xf32>, vector<4x64xf32>, vector<8x64xf32> -> vector<8x64xf32>
    %c0_12 = arith.constant 0 : index
    %c0_13 = arith.constant 0 : index
    %27 = vector.load %arg4[%c0_12, %c0_13] : memref<1x64xf32, #tpu.memory_space<vmem>>, vector<1x64xf32>
    %28 = vector.broadcast %27 : vector<1x64xf32> to vector<8x64xf32>
    %29 = arith.addf %26, %28 : vector<8x64xf32>
    %cst_14 = arith.constant 0.000000e+00 : f32
    %30 = vector.broadcast %cst_14 : f32 to vector<8x64xf32>
    %31 = arith.maximumf %29, %30 : vector<8x64xf32>
    %c0_15 = arith.constant 0 : index
    %c0_16 = arith.constant 0 : index
    %32 = vector.load %arg5[%c0_15, %c0_16] : memref<64x64xf32, #tpu.memory_space<vmem>>, vector<64x64xf32>
    %cst_17 = arith.constant dense<0.000000e+00> : vector<8x64xf32>
    %33 = tpu.matmul %31, %32, %cst_17 {dimension_numbers = #tpu.dot_dimension_numbers<[1], [0], [0], [1], [0, 0, 1, 1], [], []>} : vector<8x64xf32>, vector<64x64xf32>, vector<8x64xf32> -> vector<8x64xf32>
    %c0_18 = arith.constant 0 : index
    %c0_19 = arith.constant 0 : index
    %34 = vector.load %arg6[%c0_18, %c0_19] : memref<1x64xf32, #tpu.memory_space<vmem>>, vector<1x64xf32>
    %35 = vector.broadcast %34 : vector<1x64xf32> to vector<8x64xf32>
    %36 = arith.addf %33, %35 : vector<8x64xf32>
    %cst_20 = arith.constant 0.000000e+00 : f32
    %37 = vector.broadcast %cst_20 : f32 to vector<8x64xf32>
    %38 = arith.maximumf %36, %37 : vector<8x64xf32>
    %c0_21 = arith.constant 0 : index
    %c0_22 = arith.constant 0 : index
    %39 = vector.load %arg7[%c0_21, %c0_22] : memref<8x64xf32, #tpu.memory_space<vmem>>, vector<8x64xf32>
    tpu.vector_store %arg7[%c0_21, %c0_22], %38 {strides = array<i32>} : memref<8x64xf32, #tpu.memory_space<vmem>>, vector<8x64xf32>,
    return
  }
}

module attributes {stable_mosaic.version = 11 : i64} {
  func.func @literals_kernel(%arg0: memref<4x128xf32, #tpu.memory_space<vmem>>, %arg1: memref<1x128xf32, #tpu.memory_space<vmem>>, %arg2: memref<1x128xf32, #tpu.memory_space<vmem>>, %arg3: memref<4x128xf32, #tpu.memory_space<vmem>>) attributes {dimension_semantics = [], scalar_prefetch = 0 : i64, scratch_operands = 0 : i64, tpu.core_type = #tpu.core_type<tc>} {
    %c0 = arith.constant 0 : index
    %c0_0 = arith.constant 0 : index
    %0 = vector.load %arg0[%c0, %c0_0] : memref<4x128xf32, #tpu.memory_space<vmem>>, vector<4x128xf32>
    %c64_i32 = arith.constant 64 : i32
    %1 = tpu.dynamic_rotate %0 by %c64_i32 dim 1 : vector<4x128xf32>, i32 -> vector<4x128xf32>
    %c0_1 = arith.constant 0 : index
    %c0_2 = arith.constant 0 : index
    %2 = vector.load %arg1[%c0_1, %c0_2] : memref<1x128xf32, #tpu.memory_space<vmem>>, vector<1x128xf32>
    %3 = vector.broadcast %2 : vector<1x128xf32> to vector<4x128xf32>
    %4 = arith.mulf %3, %0 : vector<4x128xf32>
    %c0_3 = arith.constant 0 : index
    %c0_4 = arith.constant 0 : index
    %5 = vector.load %arg2[%c0_3, %c0_4] : memref<1x128xf32, #tpu.memory_space<vmem>>, vector<1x128xf32>
    %6 = vector.broadcast %5 : vector<1x128xf32> to vector<4x128xf32>
    %7 = arith.mulf %6, %1 : vector<4x128xf32>
    %8 = arith.addf %4, %7 : vector<4x128xf32>
    %cst = arith.constant 0.000000e+00 : f32
    %9 = vector.broadcast %cst : f32 to vector<4x128xf32>
    %10 = arith.maximumf %8, %9 : vector<4x128xf32>
    %c0_5 = arith.constant 0 : index
    %c0_6 = arith.constant 0 : index
    %11 = vector.load %arg3[%c0_5, %c0_6] : memref<4x128xf32, #tpu.memory_space<vmem>>, vector<4x128xf32>
    tpu.vector_store %arg3[%c0_5, %c0_6], %10 {strides = array<i32>} : memref<4x128xf32, #tpu.memory_space<vmem>>, vector<4x128xf32>,
    return
  }
}

module attributes {stable_mosaic.version = 11 : i64} {
  func.func @conv_kernel(%arg0: i32, %arg1: memref<1x128xi32, #tpu.memory_space<vmem>>, %arg2: memref<128x128xf32, #tpu.memory_space<vmem>>, %arg3: memref<8x64xf32, #tpu.memory_space<vmem>>, %arg4: memref<128x64xf32, #tpu.memory_space<vmem>>, %arg5: memref<1x64xf32, #tpu.memory_space<vmem>>, %arg6: memref<1x64xf32, #tpu.memory_space<vmem>>, %arg7: memref<1x64xf32, #tpu.memory_space<vmem>>, %arg8: memref<64x64xf32, #tpu.memory_space<vmem>>, %arg9: memref<1x64xf32, #tpu.memory_space<vmem>>, %arg10: memref<1x64xf32, #tpu.memory_space<vmem>>, %arg11: memref<1x64xf32, #tpu.memory_space<vmem>>, %arg12: memref<64x64xf32, #tpu.memory_space<vmem>>, %arg13: memref<64x64xf32, #tpu.memory_space<vmem>>, %arg14: memref<1x64xf32, #tpu.memory_space<vmem>>, %arg15: memref<64x64xf32, #tpu.memory_space<vmem>>, %arg16: memref<1x64xf32, #tpu.memory_space<vmem>>, %arg17: memref<8x64xf32, #tpu.memory_space<vmem>>, %arg18: memref<8x64xf32, #tpu.memory_space<vmem>>) attributes {dimension_semantics = [#tpu.dimension_semantics<arbitrary>], iteration_bounds = array<i64: 1>, scalar_prefetch = 0 : i64, scratch_operands = 1 : i64, tpu.core_type = #tpu.core_type<tc>, window_params = [{transform_indices = @transform_0, window_bounds = array<i64: 1, 128>}, {transform_indices = @transform_1, window_bounds = array<i64: 128, 128>}, {pipeline_mode = #tpu.pipeline_mode<synchronous>, transform_indices = @transform_2, window_bounds = array<i64: 8, 64>}, {pipeline_mode = #tpu.pipeline_mode<synchronous>, transform_indices = @transform_3, window_bounds = array<i64: 128, 64>}, {pipeline_mode = #tpu.pipeline_mode<synchronous>, transform_indices = @transform_4, window_bounds = array<i64: 1, 64>}, {pipeline_mode = #tpu.pipeline_mode<synchronous>, transform_indices = @transform_5, window_bounds = array<i64: 1, 64>}, {pipeline_mode = #tpu.pipeline_mode<synchronous>, transform_indices = @transform_6, window_bounds = array<i64: 1, 64>}, {pipeline_mode = #tpu.pipeline_mode<synchronous>, transform_indices = @transform_7, window_bounds = array<i64: 64, 64>}, {pipeline_mode = #tpu.pipeline_mode<synchronous>, transform_indices = @transform_8, window_bounds = array<i64: 1, 64>}, {pipeline_mode = #tpu.pipeline_mode<synchronous>, transform_indices = @transform_9, window_bounds = array<i64: 1, 64>}, {pipeline_mode = #tpu.pipeline_mode<synchronous>, transform_indices = @transform_10, window_bounds = array<i64: 1, 64>}, {pipeline_mode = #tpu.pipeline_mode<synchronous>, transform_indices = @transform_11, window_bounds = array<i64: 64, 64>}, {pipeline_mode = #tpu.pipeline_mode<synchronous>, transform_indices = @transform_12, window_bounds = array<i64: 64, 64>}, {pipeline_mode = #tpu.pipeline_mode<synchronous>, transform_indices = @transform_13, window_bounds = array<i64: 1, 64>}, {pipeline_mode = #tpu.pipeline_mode<synchronous>, transform_indices = @transform_14, window_bounds = array<i64: 64, 64>}, {pipeline_mode = #tpu.pipeline_mode<synchronous>, transform_indices = @transform_15, window_bounds = array<i64: 1, 64>}, {pipeline_mode = #tpu.pipeline_mode<synchronous>, transform_indices = @transform_16, window_bounds = array<i64: 8, 64>}]} {
    %c0_i32 = arith.constant 0 : i32
    %0 = arith.cmpi eq, %arg0, %c0_i32 : i32
    %1 = arith.extui %0 : i1 to i32
    %c0_i32_0 = arith.constant 0 : i32
    %2 = arith.cmpi ne, %1, %c0_i32_0 : i32
    scf.if %2 {
      %cst_30 = arith.constant 0.000000e+00 : f32
      %53 = vector.broadcast %cst_30 : f32 to vector<8x64xf32>
      %c0_31 = arith.constant 0 : index
      %c0_32 = arith.constant 0 : index
      %54 = vector.load %arg18[%c0_31, %c0_32] : memref<8x64xf32, #tpu.memory_space<vmem>>, vector<8x64xf32>
      tpu.vector_store %arg18[%c0_31, %c0_32], %53 {strides = array<i32>} : memref<8x64xf32, #tpu.memory_space<vmem>>, vector<8x64xf32>,
    } else {
    }
    %c0 = arith.constant 0 : index
    %c0_1 = arith.constant 0 : index
    %3 = vector.load %arg2[%c0, %c0_1] : memref<128x128xf32, #tpu.memory_space<vmem>>, vector<128x128xf32>
    %c0_2 = arith.constant 0 : index
    %c0_3 = arith.constant 0 : index
    %4 = vector.load %arg4[%c0_2, %c0_3] : memref<128x64xf32, #tpu.memory_space<vmem>>, vector<128x64xf32>
    %cst = arith.constant dense<0.000000e+00> : vector<128x64xf32>
    %5 = tpu.matmul %3, %4, %cst {dimension_numbers = #tpu.dot_dimension_numbers<[1], [0], [0], [1], [0, 0, 1, 1], [], []>} : vector<128x128xf32>, vector<128x64xf32>, vector<128x64xf32> -> vector<128x64xf32>
    %c0_4 = arith.constant 0 : index
    %c0_5 = arith.constant 0 : index
    %6 = vector.load %arg5[%c0_4, %c0_5] : memref<1x64xf32, #tpu.memory_space<vmem>>, vector<1x64xf32>
    %7 = vector.broadcast %6 : vector<1x64xf32> to vector<128x64xf32>
    %8 = arith.addf %5, %7 : vector<128x64xf32>
    %c0_6 = arith.constant 0 : index
    %c0_7 = arith.constant 0 : index
    %9 = vector.load %arg6[%c0_6, %c0_7] : memref<1x64xf32, #tpu.memory_space<vmem>>, vector<1x64xf32>
    %c0_8 = arith.constant 0 : index
    %c0_9 = arith.constant 0 : index
    %10 = vector.load %arg7[%c0_8, %c0_9] : memref<1x64xf32, #tpu.memory_space<vmem>>, vector<1x64xf32>
    %cst_10 = arith.constant dense<0.000000e+00> : vector<128xf32>
    %11 = vector.multi_reduction <add>, %8, %cst_10 [1] : vector<128x64xf32> to vector<128xf32>
    %12 = vector.shape_cast %11 : vector<128xf32> to vector<128x1xf32>
    %cst_11 = arith.constant 6.400000e+01 : f32
    %13 = vector.broadcast %cst_11 : f32 to vector<128x1xf32>
    %14 = arith.divf %12, %13 : vector<128x1xf32>
    %15 = vector.broadcast %14 : vector<128x1xf32> to vector<128x64xf32>
    %16 = arith.subf %8, %15 : vector<128x64xf32>
    %17 = arith.mulf %16, %16 : vector<128x64xf32>
    %cst_12 = arith.constant dense<0.000000e+00> : vector<128xf32>
    %18 = vector.multi_reduction <add>, %17, %cst_12 [1] : vector<128x64xf32> to vector<128xf32>
    %19 = vector.shape_cast %18 : vector<128xf32> to vector<128x1xf32>
    %cst_13 = arith.constant 6.400000e+01 : f32
    %20 = vector.broadcast %cst_13 : f32 to vector<128x1xf32>
    %21 = arith.divf %19, %20 : vector<128x1xf32>
    %22 = vector.broadcast %14 : vector<128x1xf32> to vector<128x64xf32>
    %23 = arith.subf %8, %22 : vector<128x64xf32>
    %cst_14 = arith.constant 9.99999974E-6 : f32
    %24 = vector.broadcast %cst_14 : f32 to vector<128x1xf32>
    %25 = arith.addf %21, %24 : vector<128x1xf32>
    %26 = math.rsqrt %25 : vector<128x1xf32>
    %27 = vector.broadcast %26 : vector<128x1xf32> to vector<128x64xf32>
    %28 = arith.mulf %23, %27 : vector<128x64xf32>
    %29 = vector.broadcast %9 : vector<1x64xf32> to vector<128x64xf32>
    %30 = arith.mulf %28, %29 : vector<128x64xf32>
    %31 = vector.broadcast %10 : vector<1x64xf32> to vector<128x64xf32>
    %32 = arith.addf %30, %31 : vector<128x64xf32>
    %cst_15 = arith.constant 0.000000e+00 : f32
    %33 = vector.broadcast %cst_15 : f32 to vector<128x64xf32>
    %34 = arith.maximumf %32, %33 : vector<128x64xf32>
    %c0_16 = arith.constant 0 : index
    %c0_17 = arith.constant 0 : index
    %35 = vector.load %arg8[%c0_16, %c0_17] : memref<64x64xf32, #tpu.memory_space<vmem>>, vector<64x64xf32>
    %cst_18 = arith.constant dense<0.000000e+00> : vector<128x64xf32>
    %36 = tpu.matmul %34, %35, %cst_18 {dimension_numbers = #tpu.dot_dimension_numbers<[1], [0], [0], [1], [0, 0, 1, 1], [], []>} : vector<128x64xf32>, vector<64x64xf32>, vector<128x64xf32> -> vector<128x64xf32>
    %c0_19 = arith.constant 0 : index
    %c0_20 = arith.constant 0 : index
    %37 = vector.load %arg9[%c0_19, %c0_20] : memref<1x64xf32, #tpu.memory_space<vmem>>, vector<1x64xf32>
    %38 = vector.broadcast %37 : vector<1x64xf32> to vector<128x64xf32>
    %39 = arith.addf %36, %38 : vector<128x64xf32>
    %40 = tpu.iota {dimensions = array<i32: 0>} : vector<8x128xi32>
    %c0_21 = arith.constant 0 : index
    %c0_22 = arith.constant 0 : index
    %41 = vector.load %arg1[%c0_21, %c0_22] : memref<1x128xi32, #tpu.memory_space<vmem>>, vector<1x128xi32>
    %42 = vector.broadcast %41 : vector<1x128xi32> to vector<8x128xi32>
    %43 = arith.cmpi eq, %42, %40 : vector<8x128xi32>
    %44 = arith.extui %43 : vector<8x128xi1> to vector<8x128xi32>
    %45 = arith.sitofp %44 : vector<8x128xi32> to vector<8x128xf32>
    %c0_23 = arith.constant 0 : index
    %c0_24 = arith.constant 0 : index
    %46 = vector.load %arg18[%c0_23, %c0_24] : memref<8x64xf32, #tpu.memory_space<vmem>>, vector<8x64xf32>
    %cst_25 = arith.constant dense<0.000000e+00> : vector<8x64xf32>
    %47 = tpu.matmul %45, %39, %cst_25 {dimension_numbers = #tpu.dot_dimension_numbers<[1], [0], [0], [1], [0, 0, 1, 1], [], []>} : vector<8x128xf32>, vector<128x64xf32>, vector<8x64xf32> -> vector<8x64xf32>
    %48 = arith.addf %46, %47 : vector<8x64xf32>
    %c0_26 = arith.constant 0 : index
    %c0_27 = arith.constant 0 : index
    %49 = vector.load %arg18[%c0_26, %c0_27] : memref<8x64xf32, #tpu.memory_space<vmem>>, vector<8x64xf32>
    tpu.vector_store %arg18[%c0_26, %c0_27], %48 {strides = array<i32>} : memref<8x64xf32, #tpu.memory_space<vmem>>, vector<8x64xf32>,
    %c0_i32_28 = arith.constant 0 : i32
    %50 = arith.cmpi eq, %arg0, %c0_i32_28 : i32
    %51 = arith.extui %50 : i1 to i32
    %c0_i32_29 = arith.constant 0 : i32
    %52 = arith.cmpi ne, %51, %c0_i32_29 : i32
    scf.if %52 {
      %c0_30 = arith.constant 0 : index
      %c0_31 = arith.constant 0 : index
      %53 = vector.load %arg18[%c0_30, %c0_31] : memref<8x64xf32, #tpu.memory_space<vmem>>, vector<8x64xf32>
      %c0_32 = arith.constant 0 : index
      %c0_33 = arith.constant 0 : index
      %54 = vector.load %arg10[%c0_32, %c0_33] : memref<1x64xf32, #tpu.memory_space<vmem>>, vector<1x64xf32>
      %c0_34 = arith.constant 0 : index
      %c0_35 = arith.constant 0 : index
      %55 = vector.load %arg11[%c0_34, %c0_35] : memref<1x64xf32, #tpu.memory_space<vmem>>, vector<1x64xf32>
      %cst_36 = arith.constant dense<0.000000e+00> : vector<8xf32>
      %56 = vector.multi_reduction <add>, %53, %cst_36 [1] : vector<8x64xf32> to vector<8xf32>
      %57 = vector.shape_cast %56 : vector<8xf32> to vector<8x1xf32>
      %cst_37 = arith.constant 6.400000e+01 : f32
      %58 = vector.broadcast %cst_37 : f32 to vector<8x1xf32>
      %59 = arith.divf %57, %58 : vector<8x1xf32>
      %60 = vector.broadcast %59 : vector<8x1xf32> to vector<8x64xf32>
      %61 = arith.subf %53, %60 : vector<8x64xf32>
      %62 = arith.mulf %61, %61 : vector<8x64xf32>
      %cst_38 = arith.constant dense<0.000000e+00> : vector<8xf32>
      %63 = vector.multi_reduction <add>, %62, %cst_38 [1] : vector<8x64xf32> to vector<8xf32>
      %64 = vector.shape_cast %63 : vector<8xf32> to vector<8x1xf32>
      %cst_39 = arith.constant 6.400000e+01 : f32
      %65 = vector.broadcast %cst_39 : f32 to vector<8x1xf32>
      %66 = arith.divf %64, %65 : vector<8x1xf32>
      %67 = vector.broadcast %59 : vector<8x1xf32> to vector<8x64xf32>
      %68 = arith.subf %53, %67 : vector<8x64xf32>
      %cst_40 = arith.constant 9.99999974E-6 : f32
      %69 = vector.broadcast %cst_40 : f32 to vector<8x1xf32>
      %70 = arith.addf %66, %69 : vector<8x1xf32>
      %71 = math.rsqrt %70 : vector<8x1xf32>
      %72 = vector.broadcast %71 : vector<8x1xf32> to vector<8x64xf32>
      %73 = arith.mulf %68, %72 : vector<8x64xf32>
      %74 = vector.broadcast %54 : vector<1x64xf32> to vector<8x64xf32>
      %75 = arith.mulf %73, %74 : vector<8x64xf32>
      %76 = vector.broadcast %55 : vector<1x64xf32> to vector<8x64xf32>
      %77 = arith.addf %75, %76 : vector<8x64xf32>
      %c0_41 = arith.constant 0 : index
      %c0_42 = arith.constant 0 : index
      %78 = vector.load %arg12[%c0_41, %c0_42] : memref<64x64xf32, #tpu.memory_space<vmem>>, vector<64x64xf32>
      %cst_43 = arith.constant dense<0.000000e+00> : vector<8x64xf32>
      %79 = tpu.matmul %77, %78, %cst_43 {dimension_numbers = #tpu.dot_dimension_numbers<[1], [0], [0], [1], [0, 0, 1, 1], [], []>} : vector<8x64xf32>, vector<64x64xf32>, vector<8x64xf32> -> vector<8x64xf32>
      %c0_44 = arith.constant 0 : index
      %c0_45 = arith.constant 0 : index
      %80 = vector.load %arg3[%c0_44, %c0_45] : memref<8x64xf32, #tpu.memory_space<vmem>>, vector<8x64xf32>
      %c0_46 = arith.constant 0 : index
      %c0_47 = arith.constant 0 : index
      %81 = vector.load %arg13[%c0_46, %c0_47] : memref<64x64xf32, #tpu.memory_space<vmem>>, vector<64x64xf32>
      %cst_48 = arith.constant dense<0.000000e+00> : vector<8x64xf32>
      %82 = tpu.matmul %80, %81, %cst_48 {dimension_numbers = #tpu.dot_dimension_numbers<[1], [0], [0], [1], [0, 0, 1, 1], [], []>} : vector<8x64xf32>, vector<64x64xf32>, vector<8x64xf32> -> vector<8x64xf32>
      %83 = arith.addf %79, %82 : vector<8x64xf32>
      %c0_49 = arith.constant 0 : index
      %c0_50 = arith.constant 0 : index
      %84 = vector.load %arg14[%c0_49, %c0_50] : memref<1x64xf32, #tpu.memory_space<vmem>>, vector<1x64xf32>
      %85 = vector.broadcast %84 : vector<1x64xf32> to vector<8x64xf32>
      %86 = arith.addf %83, %85 : vector<8x64xf32>
      %cst_51 = arith.constant 0.000000e+00 : f32
      %87 = vector.broadcast %cst_51 : f32 to vector<8x64xf32>
      %88 = arith.maximumf %86, %87 : vector<8x64xf32>
      %c0_52 = arith.constant 0 : index
      %c0_53 = arith.constant 0 : index
      %89 = vector.load %arg15[%c0_52, %c0_53] : memref<64x64xf32, #tpu.memory_space<vmem>>, vector<64x64xf32>
      %cst_54 = arith.constant dense<0.000000e+00> : vector<8x64xf32>
      %90 = tpu.matmul %88, %89, %cst_54 {dimension_numbers = #tpu.dot_dimension_numbers<[1], [0], [0], [1], [0, 0, 1, 1], [], []>} : vector<8x64xf32>, vector<64x64xf32>, vector<8x64xf32> -> vector<8x64xf32>
      %c0_55 = arith.constant 0 : index
      %c0_56 = arith.constant 0 : index
      %91 = vector.load %arg16[%c0_55, %c0_56] : memref<1x64xf32, #tpu.memory_space<vmem>>, vector<1x64xf32>
      %92 = vector.broadcast %91 : vector<1x64xf32> to vector<8x64xf32>
      %93 = arith.addf %90, %92 : vector<8x64xf32>
      %c0_57 = arith.constant 0 : index
      %c0_58 = arith.constant 0 : index
      %94 = vector.load %arg17[%c0_57, %c0_58] : memref<8x64xf32, #tpu.memory_space<vmem>>, vector<8x64xf32>
      tpu.vector_store %arg17[%c0_57, %c0_58], %93 {strides = array<i32>} : memref<8x64xf32, #tpu.memory_space<vmem>>, vector<8x64xf32>,
    } else {
    }
    return
  }
  func.func @transform_0(%arg0: i32) -> (i32, i32) {
    %c0_i32 = arith.constant 0 : i32
    %c0_i32_0 = arith.constant 0 : i32
    return %c0_i32, %arg0 : i32, i32
  }
  func.func @transform_1(%arg0: i32) -> (i32, i32) {
    %c0_i32 = arith.constant 0 : i32
    %c0_i32_0 = arith.constant 0 : i32
    return %arg0, %c0_i32 : i32, i32
  }
  func.func @transform_2(%arg0: i32) -> (i32, i32) {
    %c0_i32 = arith.constant 0 : i32
    %c0_i32_0 = arith.constant 0 : i32
    %c0_i32_1 = arith.constant 0 : i32
    return %c0_i32, %c0_i32_0 : i32, i32
  }
  func.func @transform_3(%arg0: i32) -> (i32, i32) {
    %c0_i32 = arith.constant 0 : i32
    %c0_i32_0 = arith.constant 0 : i32
    %c0_i32_1 = arith.constant 0 : i32
    return %c0_i32, %c0_i32_0 : i32, i32
  }
  func.func @transform_4(%arg0: i32) -> (i32, i32) {
    %c0_i32 = arith.constant 0 : i32
    %c0_i32_0 = arith.constant 0 : i32
    %c0_i32_1 = arith.constant 0 : i32
    return %c0_i32, %c0_i32_0 : i32, i32
  }
  func.func @transform_5(%arg0: i32) -> (i32, i32) {
    %c0_i32 = arith.constant 0 : i32
    %c0_i32_0 = arith.constant 0 : i32
    %c0_i32_1 = arith.constant 0 : i32
    return %c0_i32, %c0_i32_0 : i32, i32
  }
  func.func @transform_6(%arg0: i32) -> (i32, i32) {
    %c0_i32 = arith.constant 0 : i32
    %c0_i32_0 = arith.constant 0 : i32
    %c0_i32_1 = arith.constant 0 : i32
    return %c0_i32, %c0_i32_0 : i32, i32
  }
  func.func @transform_7(%arg0: i32) -> (i32, i32) {
    %c0_i32 = arith.constant 0 : i32
    %c0_i32_0 = arith.constant 0 : i32
    %c0_i32_1 = arith.constant 0 : i32
    return %c0_i32, %c0_i32_0 : i32, i32
  }
  func.func @transform_8(%arg0: i32) -> (i32, i32) {
    %c0_i32 = arith.constant 0 : i32
    %c0_i32_0 = arith.constant 0 : i32
    %c0_i32_1 = arith.constant 0 : i32
    return %c0_i32, %c0_i32_0 : i32, i32
  }
  func.func @transform_9(%arg0: i32) -> (i32, i32) {
    %c0_i32 = arith.constant 0 : i32
    %c0_i32_0 = arith.constant 0 : i32
    %c0_i32_1 = arith.constant 0 : i32
    return %c0_i32, %c0_i32_0 : i32, i32
  }
  func.func @transform_10(%arg0: i32) -> (i32, i32) {
    %c0_i32 = arith.constant 0 : i32
    %c0_i32_0 = arith.constant 0 : i32
    %c0_i32_1 = arith.constant 0 : i32
    return %c0_i32, %c0_i32_0 : i32, i32
  }
  func.func @transform_11(%arg0: i32) -> (i32, i32) {
    %c0_i32 = arith.constant 0 : i32
    %c0_i32_0 = arith.constant 0 : i32
    %c0_i32_1 = arith.constant 0 : i32
    return %c0_i32, %c0_i32_0 : i32, i32
  }
  func.func @transform_12(%arg0: i32) -> (i32, i32) {
    %c0_i32 = arith.constant 0 : i32
    %c0_i32_0 = arith.constant 0 : i32
    %c0_i32_1 = arith.constant 0 : i32
    return %c0_i32, %c0_i32_0 : i32, i32
  }
  func.func @transform_13(%arg0: i32) -> (i32, i32) {
    %c0_i32 = arith.constant 0 : i32
    %c0_i32_0 = arith.constant 0 : i32
    %c0_i32_1 = arith.constant 0 : i32
    return %c0_i32, %c0_i32_0 : i32, i32
  }
  func.func @transform_14(%arg0: i32) -> (i32, i32) {
    %c0_i32 = arith.constant 0 : i32
    %c0_i32_0 = arith.constant 0 : i32
    %c0_i32_1 = arith.constant 0 : i32
    return %c0_i32, %c0_i32_0 : i32, i32
  }
  func.func @transform_15(%arg0: i32) -> (i32, i32) {
    %c0_i32 = arith.constant 0 : i32
    %c0_i32_0 = arith.constant 0 : i32
    %c0_i32_1 = arith.constant 0 : i32
    return %c0_i32, %c0_i32_0 : i32, i32
  }
  func.func @transform_16(%arg0: i32) -> (i32, i32) {
    %c0_i32 = arith.constant 0 : i32
    %c0_i32_0 = arith.constant 0 : i32
    %c0_i32_1 = arith.constant 0 : i32
    return %c0_i32, %c0_i32_0 : i32, i32
  }
}

module attributes {stable_mosaic.version = 11 : i64} {
  func.func @literals_final_kernel(%arg0: memref<4x128xf32, #tpu.memory_space<vmem>>, %arg1: memref<1x128xf32, #tpu.memory_space<vmem>>, %arg2: memref<1x128xf32, #tpu.memory_space<vmem>>, %arg3: memref<128x128xf32, #tpu.memory_space<vmem>>, %arg4: memref<1x128xf32, #tpu.memory_space<vmem>>, %arg5: memref<128x128xf32, #tpu.memory_space<vmem>>, %arg6: memref<4x128xf32, #tpu.memory_space<vmem>>) attributes {dimension_semantics = [], scalar_prefetch = 0 : i64, scratch_operands = 0 : i64, tpu.core_type = #tpu.core_type<tc>} {
    %c0 = arith.constant 0 : index
    %c0_0 = arith.constant 0 : index
    %0 = vector.load %arg0[%c0, %c0_0] : memref<4x128xf32, #tpu.memory_space<vmem>>, vector<4x128xf32>
    %c64_i32 = arith.constant 64 : i32
    %1 = tpu.dynamic_rotate %0 by %c64_i32 dim 1 : vector<4x128xf32>, i32 -> vector<4x128xf32>
    %c0_1 = arith.constant 0 : index
    %c0_2 = arith.constant 0 : index
    %2 = vector.load %arg1[%c0_1, %c0_2] : memref<1x128xf32, #tpu.memory_space<vmem>>, vector<1x128xf32>
    %3 = vector.broadcast %2 : vector<1x128xf32> to vector<4x128xf32>
    %4 = arith.mulf %3, %0 : vector<4x128xf32>
    %c0_3 = arith.constant 0 : index
    %c0_4 = arith.constant 0 : index
    %5 = vector.load %arg2[%c0_3, %c0_4] : memref<1x128xf32, #tpu.memory_space<vmem>>, vector<1x128xf32>
    %6 = vector.broadcast %5 : vector<1x128xf32> to vector<4x128xf32>
    %7 = arith.mulf %6, %1 : vector<4x128xf32>
    %8 = arith.addf %4, %7 : vector<4x128xf32>
    %cst = arith.constant 0.000000e+00 : f32
    %9 = vector.broadcast %cst : f32 to vector<4x128xf32>
    %10 = arith.maximumf %8, %9 : vector<4x128xf32>
    %c0_5 = arith.constant 0 : index
    %c0_6 = arith.constant 0 : index
    %11 = vector.load %arg3[%c0_5, %c0_6] : memref<128x128xf32, #tpu.memory_space<vmem>>, vector<128x128xf32>
    %cst_7 = arith.constant dense<0.000000e+00> : vector<4x128xf32>
    %12 = tpu.matmul %10, %11, %cst_7 {dimension_numbers = #tpu.dot_dimension_numbers<[1], [0], [0], [1], [0, 0, 1, 1], [], []>} : vector<4x128xf32>, vector<128x128xf32>, vector<4x128xf32> -> vector<4x128xf32>
    %c0_8 = arith.constant 0 : index
    %c0_9 = arith.constant 0 : index
    %13 = vector.load %arg4[%c0_8, %c0_9] : memref<1x128xf32, #tpu.memory_space<vmem>>, vector<1x128xf32>
    %14 = vector.broadcast %13 : vector<1x128xf32> to vector<4x128xf32>
    %15 = arith.addf %12, %14 : vector<4x128xf32>
    %cst_10 = arith.constant 0.000000e+00 : f32
    %16 = vector.broadcast %cst_10 : f32 to vector<4x128xf32>
    %17 = arith.maximumf %15, %16 : vector<4x128xf32>
    %c0_11 = arith.constant 0 : index
    %c0_12 = arith.constant 0 : index
    %18 = vector.load %arg5[%c0_11, %c0_12] : memref<128x128xf32, #tpu.memory_space<vmem>>, vector<128x128xf32>
    %cst_13 = arith.constant dense<0.000000e+00> : vector<4x128xf32>
    %19 = tpu.matmul %17, %18, %cst_13 {dimension_numbers = #tpu.dot_dimension_numbers<[1], [0], [0], [1], [0, 0, 1, 1], [], []>} : vector<4x128xf32>, vector<128x128xf32>, vector<4x128xf32> -> vector<4x128xf32>
    %c0_14 = arith.constant 0 : index
    %c0_15 = arith.constant 0 : index
    %20 = vector.load %arg6[%c0_14, %c0_15] : memref<4x128xf32, #tpu.memory_space<vmem>>, vector<4x128xf32>
    tpu.vector_store %arg6[%c0_14, %c0_15], %19 {strides = array<i32>} : memref<4x128xf32, #tpu.memory_space<vmem>>, vector<4x128xf32>,
    return
  }
}

</mosaic_0001>

<bundles_post_ra>
// kernel: forward.12
= control target key start
LH: loop header
LB: loop body
LE: loop exit
PB: predicated region body
PF: predicated region fallthrough
CT: control target
= control target key end

     0   :  { %s43_s14 = smov 64   ;;  %s76_s0 = inlined_call_operand.vmem [shape: f32[4,128], index: 0, kind: input, shape index: {}]   ;;  %s77_s1 = inlined_call_operand.vmem [shape: f32[1,128], index: 1, kind: input, shape index: {}]   ;;  %s78_s2 = inlined_call_operand.vmem [shape: f32[1,128], index: 2, kind: input, shape index: {}]   ;;  %s79_s3 = inlined_call_operand.vmem [shape: f32[4,128], index: 3, kind: output, shape index: {}]  }
   0x1   :  { %v14_v0 = vld [vmem:[%s76_s0] sm:$0xf] }
   0x2   :  { %15 = vrot.lane.b32.xlu0 %v14_v0, %s43_s14  ;;  %v40_v1 = vld [vmem:[%s77_s1] ss:$0 sm:$0xff] }
   0x3   :  { %v41_v2 = vld [vmem:[%s78_s2] ss:$0 sm:$0xff]  ;;  %v24_v3 = vmul.f32 %v40_v1, %v14_v0 }
  0x74   :  { %v16_v4 = vpop.permute.xlu0 %15 }
  0x75   :  { %v32_v5 = vmul.f32 %v41_v2, %v16_v4 }
  0x77   :  { %v33_v6 = vadd.f32 %v32_v5, %v24_v3 }
  0x79   :  { %v34_v7 = vmax.f32 %v33_v6, 0.0 }
  0x7b   :  { %35 = vst [vmem:[%s79_s3] sm:$0xf] %v34_v7 }

// kernel: forward.9
= control target key start
LH: loop header
LB: loop body
LE: loop exit
PB: predicated region body
PF: predicated region fallthrough
CT: control target
= control target key end

     0   :  { %vm29_vm0 = vcmask 48128   ;;  %vm69_vm1 = vcmask 1045504   ;;  %v298_v7 = vmov 0.0   ;;  %vm299_vm2 = vmmov 0   ;;  %s389_s0 = inlined_call_operand.vmem [shape: f32[8,6], index: 0, kind: input, shape index: {}]   ;;  %s390_s3 = inlined_call_operand.vmem [shape: f32[6,64], index: 3, kind: input, shape index: {}]   ;;  %s391_s5 = inlined_call_operand.vmem [shape: f32[64,64], index: 5, kind: input, shape index: {}]   ;;  %s392_s1 = inlined_call_operand.vmem [shape: f32[1,6], index: 1, kind: input, shape index: {}]   ;;  %s393_s2 = inlined_call_operand.vmem [shape: f32[1,6], index: 2, kind: input, shape index: {}]   ;;  %s394_s4 = inlined_call_operand.vmem [shape: f32[1,64], index: 4, kind: input, shape index: {}]   ;;  %s395_s6 = inlined_call_operand.vmem [shape: f32[1,64], index: 6, kind: input, shape index: {}]   ;;  %s396_s7 = inlined_call_operand.vmem [shape: f32[8,64], index: 7, kind: output, shape index: {}]  }
   0x1   :  { %v26_v0 = vld [vmem:[%s389_s0] sm:$0xff]  ;;  %257 = vmatprep.subr.mxu0 %v298_v7  ;;  %259 = vmatprep.mubr.msk.f32.mxu0 %vm299_vm2, %v298_v7  ;;  %v300_v9 = vmov 0.0|0.0   ;;  %v145_v11 = vld [vmem:[%s391_s5 + $0x8] sm:$0xff]  ;;  %v146_v12 = vld [vmem:[%s391_s5 + $0x10] sm:$0xff]  ;;  %vm159_vm3 = vcmask 523264  }
   0x2   :  { %v30_v1 = vsel %vm29_vm0, %v26_v0, 0.0  ;;  %v58_v8 = vld [vmem:[%s390_s3] sm:$0x3f]  ;;  %278 = vmatprep.mubr.msk.f32.mxu1 %vm299_vm2, %v298_v7  ;;  %281 = vmatprep.subr.bf16.mxu1 %v300_v9  ;;  %v147_v14 = vld [vmem:[%s391_s5 + $0x18] sm:$0xff]  ;;  %v149_v17 = vld [vmem:[%s391_s5 + $0x28] sm:$0xff] }
   0x3   :  { %31 = vadd.xlane.f32.xlu0 %v30_v1  ;;  %258 = vmatpush3.msk.msra.mxu0 %vm69_vm1, %v58_v8  ;;  %v144_v10 = vld [vmem:[%s391_s5] sm:$0xff]  ;;  %v285_v15 = vpack.c.bf16 %v147_v14, %v146_v12  ;;  %v150_v28 = vld [vmem:[%s391_s5 + $0x30] sm:$0xff]  ;;  %v151_v29 = vld [vmem:[%s391_s5 + $0x38] sm:$0xff] }
   0x4   :  { %v282_v13 = vpack.c.bf16 %v145_v11, %v144_v10  ;;  %v148_v16 = vld [vmem:[%s391_s5 + $0x20] sm:$0xff]  ;;  %v291_v30 = vpack.c.bf16 %v151_v29, %v150_v28 }
   0x5   :  { %v288_v18 = vpack.c.bf16 %v149_v17, %v148_v16  ;;  %v239_v23 = vld [vmem:[%s392_s1] ss:$0 sm:$0xff] }
   0x6   :  { %283 = vmatpush3.bf16.msra.mxu1 %v282_v13  ;;  %v240_v25 = vld [vmem:[%s393_s2] ss:$0 sm:$0xff] }
   0x7   :  { %284 = vmatprep.subr.bf16.mxu1 %v300_v9  ;;  %v241_v31 = vld [vmem:[%s394_s4] ss:$0 sm:$0xff] }
   0x8   :  { %v244_v36 = vld [vmem:[%s395_s6] ss:$0 sm:$0xff] }
   0xa   :  { %286 = vmatpush3.bf16.msra.mxu1 %v285_v15 }
   0xb   :  { %287 = vmatprep.subr.bf16.mxu1 %v300_v9 }
   0xe   :  { %289 = vmatpush3.bf16.msra.mxu1 %v288_v18 }
   0xf   :  { %290 = vmatprep.subr.bf16.mxu1 %v300_v9 }
  0x12   :  { %292 = vmatpush3.bf16.msra.mxu1 %v291_v30 }
  0x90   :  { %v32_v2 = vpop.xlane.xlu0 %31 }
  0x91   :  { %v34_v3 = vmul.f32 0.16666667, %v32_v2 }
  0x93   :  { %v35_v4 = vsub.f32 %v26_v0, %v34_v3 }
  0x95   :  { %v36_v5 = vmul.f32 %v35_v4, %v35_v4 }
  0x97   :  { %v37_v6 = vsel %vm29_vm0, %v36_v5, 0.0 }
  0x98   :  { %38 = vadd.xlane.f32.xlu0 %v37_v6 }
 0x125   :  { %v39_v19 = vpop.xlane.xlu0 %38 }
 0x126   :  { %v40_v20 = vmul.f32 0.16666667, %v39_v19 }
 0x128   :  { %v41_v21 = vadd.f32 1e-05, %v40_v20 }
 0x12a   :  { %296 = vrsqrt.f32 %v41_v21 }
 0x134   :  { %v297_v22 = vpop.eup %296 }
 0x135   :  { %v43_v24 = vmul.f32 %v297_v22, %v35_v4 }
 0x137   :  { %v50_v26 = vmul.f32 %v239_v23, %v43_v24 }
 0x139   :  { %v57_v27 = vadd.f32 %v240_v25, %v50_v26 }
 0x13b   :  { %260 = vmatmul.mubr.msk.f32.vlgmr.msra.gmra.mrb[0].mxu0 %vm29_vm0, %v57_v27 }
 0x20e   :  { %v139_v32 = vpop.f32.mrb[0].mxu0 }
 0x20f   :  { %v140_v33 = vadd.f32 %v241_v31, %v139_v32  ;;  %v261_v34 = vpop.f32.mrb[1].mxu0 }
 0x211   :  { %v143_v35 = vmax.f32 %v140_v33, 0.0 }
 0x213   :  { %279 = vmatmul.mubr.msk.f32.vlgmr.msra.gmra.mrb[0].mxu1 %vm159_vm3, %v143_v35 }
 0x2e6   :  { %v229_v37 = vpop.f32.mrb[0].mxu1 }
 0x2e7   :  { %v230_v38 = vadd.f32 %v244_v36, %v229_v37  ;;  %v280_v39 = vpop.f32.mrb[1].mxu1 }
 0x2e9   :  { %v233_v40 = vmax.f32 %v230_v38, 0.0 }
 0x2eb   :  { %234 = vst.msk [vmem:[%s396_s7] sm:$0xff] %vm159_vm3, %v233_v40 }

// kernel: forward.8
= control target key start
LH: loop header
LB: loop body
LE: loop exit
PB: predicated region body
PF: predicated region fallthrough
CT: control target
= control target key end

     0   :  { %vm29_vm0 = vcmask 31744   ;;  %vm69_vm1 = vcmask 1043456   ;;  %v298_v7 = vmov 0.0   ;;  %vm299_vm2 = vmmov 0   ;;  %s389_s0 = inlined_call_operand.vmem [shape: f32[8,4], index: 0, kind: input, shape index: {}]   ;;  %s390_s3 = inlined_call_operand.vmem [shape: f32[4,64], index: 3, kind: input, shape index: {}]   ;;  %s391_s5 = inlined_call_operand.vmem [shape: f32[64,64], index: 5, kind: input, shape index: {}]   ;;  %s392_s1 = inlined_call_operand.vmem [shape: f32[1,4], index: 1, kind: input, shape index: {}]   ;;  %s393_s2 = inlined_call_operand.vmem [shape: f32[1,4], index: 2, kind: input, shape index: {}]   ;;  %s394_s4 = inlined_call_operand.vmem [shape: f32[1,64], index: 4, kind: input, shape index: {}]   ;;  %s395_s6 = inlined_call_operand.vmem [shape: f32[1,64], index: 6, kind: input, shape index: {}]   ;;  %s396_s7 = inlined_call_operand.vmem [shape: f32[8,64], index: 7, kind: output, shape index: {}]  }
   0x1   :  { %v26_v0 = vld [vmem:[%s389_s0] sm:$0xff]  ;;  %257 = vmatprep.subr.mxu0 %v298_v7  ;;  %259 = vmatprep.mubr.msk.f32.mxu0 %vm299_vm2, %v298_v7  ;;  %v300_v9 = vmov 0.0|0.0   ;;  %v145_v11 = vld [vmem:[%s391_s5 + $0x8] sm:$0xff]  ;;  %v146_v12 = vld [vmem:[%s391_s5 + $0x10] sm:$0xff]  ;;  %vm159_vm3 = vcmask 523264  }
   0x2   :  { %v30_v1 = vsel %vm29_vm0, %v26_v0, 0.0  ;;  %v58_v8 = vld [vmem:[%s390_s3] sm:$0xf]  ;;  %278 = vmatprep.mubr.msk.f32.mxu1 %vm299_vm2, %v298_v7  ;;  %281 = vmatprep.subr.bf16.mxu1 %v300_v9  ;;  %v147_v14 = vld [vmem:[%s391_s5 + $0x18] sm:$0xff]  ;;  %v149_v17 = vld [vmem:[%s391_s5 + $0x28] sm:$0xff] }
   0x3   :  { %31 = vadd.xlane.f32.xlu0 %v30_v1  ;;  %258 = vmatpush3.msk.msra.mxu0 %vm69_vm1, %v58_v8  ;;  %v144_v10 = vld [vmem:[%s391_s5] sm:$0xff]  ;;  %v285_v15 = vpack.c.bf16 %v147_v14, %v146_v12  ;;  %v150_v28 = vld [vmem:[%s391_s5 + $0x30] sm:$0xff]  ;;  %v151_v29 = vld [vmem:[%s391_s5 + $0x38] sm:$0xff] }
   0x4   :  { %v282_v13 = vpack.c.bf16 %v145_v11, %v144_v10  ;;  %v148_v16 = vld [vmem:[%s391_s5 + $0x20] sm:$0xff]  ;;  %v291_v30 = vpack.c.bf16 %v151_v29, %v150_v28 }
   0x5   :  { %v288_v18 = vpack.c.bf16 %v149_v17, %v148_v16  ;;  %v239_v23 = vld [vmem:[%s392_s1] ss:$0 sm:$0xff] }
   0x6   :  { %283 = vmatpush3.bf16.msra.mxu1 %v282_v13  ;;  %v240_v25 = vld [vmem:[%s393_s2] ss:$0 sm:$0xff] }
   0x7   :  { %284 = vmatprep.subr.bf16.mxu1 %v300_v9  ;;  %v241_v31 = vld [vmem:[%s394_s4] ss:$0 sm:$0xff] }
   0x8   :  { %v244_v36 = vld [vmem:[%s395_s6] ss:$0 sm:$0xff] }
   0xa   :  { %286 = vmatpush3.bf16.msra.mxu1 %v285_v15 }
   0xb   :  { %287 = vmatprep.subr.bf16.mxu1 %v300_v9 }
   0xe   :  { %289 = vmatpush3.bf16.msra.mxu1 %v288_v18 }
   0xf   :  { %290 = vmatprep.subr.bf16.mxu1 %v300_v9 }
  0x12   :  { %292 = vmatpush3.bf16.msra.mxu1 %v291_v30 }
  0x90   :  { %v32_v2 = vpop.xlane.xlu0 %31 }
  0x91   :  { %v34_v3 = vmul.f32 0.25, %v32_v2 }
  0x93   :  { %v35_v4 = vsub.f32 %v26_v0, %v34_v3 }
  0x95   :  { %v36_v5 = vmul.f32 %v35_v4, %v35_v4 }
  0x97   :  { %v37_v6 = vsel %vm29_vm0, %v36_v5, 0.0 }
  0x98   :  { %38 = vadd.xlane.f32.xlu0 %v37_v6 }
 0x125   :  { %v39_v19 = vpop.xlane.xlu0 %38 }
 0x126   :  { %v40_v20 = vmul.f32 0.25, %v39_v19 }
 0x128   :  { %v41_v21 = vadd.f32 1e-05, %v40_v20 }
 0x12a   :  { %296 = vrsqrt.f32 %v41_v21 }
 0x134   :  { %v297_v22 = vpop.eup %296 }
 0x135   :  { %v43_v24 = vmul.f32 %v297_v22, %v35_v4 }
 0x137   :  { %v50_v26 = vmul.f32 %v239_v23, %v43_v24 }
 0x139   :  { %v57_v27 = vadd.f32 %v240_v25, %v50_v26 }
 0x13b   :  { %260 = vmatmul.mubr.msk.f32.vlgmr.msra.gmra.mrb[0].mxu0 %vm29_vm0, %v57_v27 }
 0x20e   :  { %v139_v32 = vpop.f32.mrb[0].mxu0 }
 0x20f   :  { %v140_v33 = vadd.f32 %v241_v31, %v139_v32  ;;  %v261_v34 = vpop.f32.mrb[1].mxu0 }
 0x211   :  { %v143_v35 = vmax.f32 %v140_v33, 0.0 }
 0x213   :  { %279 = vmatmul.mubr.msk.f32.vlgmr.msra.gmra.mrb[0].mxu1 %vm159_vm3, %v143_v35 }
 0x2e6   :  { %v229_v37 = vpop.f32.mrb[0].mxu1 }
 0x2e7   :  { %v230_v38 = vadd.f32 %v244_v36, %v229_v37  ;;  %v280_v39 = vpop.f32.mrb[1].mxu1 }
 0x2e9   :  { %v233_v40 = vmax.f32 %v230_v38, 0.0 }
 0x2eb   :  { %234 = vst.msk [vmem:[%s396_s7] sm:$0xff] %vm159_vm3, %v233_v40 }

// kernel: forward.10
= control target key start
LH: loop header
LB: loop body
LE: loop exit
PB: predicated region body
PF: predicated region fallthrough
CT: control target
= control target key end

     0   :  { %vm57_vm0 = vcmask 523264   ;;  %vm1569_vm1 = vmmov 0   ;;  %s2147_s3 = inlined_call_operand.vmem [shape: f32[128,64], index: 3, kind: input, shape index: {}]   ;;  %s2148_s1 = inlined_call_operand.vmem [shape: f32[128,128], index: 1, kind: input, shape index: {}]   ;;  %s2149_s4 = inlined_call_operand.vmem [shape: f32[1,64], index: 4, kind: input, shape index: {}]   ;;  %s2150_s7 = inlined_call_operand.vmem [shape: f32[64,64], index: 7, kind: input, shape index: {}]   ;;  %s2151_s5 = inlined_call_operand.vmem [shape: f32[1,64], index: 5, kind: input, shape index: {}, may-alias: {5,9}]   ;;  %s2152_s6 = inlined_call_operand.vmem [shape: f32[1,64], index: 6, kind: input, shape index: {}, may-alias: {6,10}]   ;;  %s2153_s8 = inlined_call_operand.vmem [shape: f32[1,64], index: 8, kind: input, shape index: {}]   ;;  %s2154_s0 = inlined_call_operand.vmem [shape: s32[1,128], index: 0, kind: input, shape index: {}]   ;;  %s2155_s12 = inlined_call_operand.vmem [shape: f32[64,64], index: 12, kind: input, shape index: {}]   ;;  %s2156_s11 = inlined_call_operand.vmem [shape: f32[64,64], index: 11, kind: input, shape index: {}]   ;;  %s2157_s2 = inlined_call_operand.vmem [shape: f32[8,64], index: 2, kind: input, shape index: {}]   ;;  %s2158_s14 = inlined_call_operand.vmem [shape: f32[64,64], index: 14, kind: input, shape index: {}]   ;;  %s2159_s9 = inlined_call_operand.vmem [shape: f32[1,64], index: 9, kind: input, shape index: {}, may-alias: {5,9}]   ;;  %s2160_s10 = inlined_call_operand.vmem [shape: f32[1,64], index: 10, kind: input, shape index: {}, may-alias: {6,10}]   ;;  %s2161_s13 = inlined_call_operand.vmem [shape: f32[1,64], index: 13, kind: input, shape index: {}]   ;;  %s2162_s15 = inlined_call_operand.vmem [shape: f32[1,64], index: 15, kind: input, shape index: {}]   ;;  %s2163_s16 = inlined_call_operand.vmem [shape: f32[8,64], index: 16, kind: output, shape index: {}]  }
   0x1   :  { %2165 = sst [smem:[#allocation3_spill]] %s2147_s3  ;;  %v59_v9 = vld [vmem:[%s2148_s1] sm:$0xff]  ;;  %v60_v25 = vld [vmem:[%s2148_s1 + $0x8] sm:$0xff]  ;;  %v61_v26 = vld [vmem:[%s2148_s1 + $0x10] sm:$0xff] }
   0x2   :  { %s2166_s23 = sld [smem:[#allocation3_spill]]  ;;  %1266 = vmatprep.mubr.f32.mxu0 %v59_v9  ;;  %v62_v27 = vld [vmem:[%s2148_s1 + $0x18] sm:$0xff]  ;;  %v63_v28 = vld [vmem:[%s2148_s1 + $0x20] sm:$0xff]  ;;  %v64_v29 = vld [vmem:[%s2148_s1 + $0x28] sm:$0xff] }
   0x3   :  { %v65_v30 = vld [vmem:[%s2148_s1 + $0x30] sm:$0xff]  ;;  %v66_v31 = vld [vmem:[%s2148_s1 + $0x38] sm:$0xff]  ;;  %v67_v32 = vld [vmem:[%s2148_s1 + $0x40] sm:$0xff] }
   0x4   :  { %v68_v33 = vld [vmem:[%s2148_s1 + $0x48] sm:$0xff]  ;;  %v69_v34 = vld [vmem:[%s2148_s1 + $0x50] sm:$0xff]  ;;  %v70_v35 = vld [vmem:[%s2148_s1 + $0x58] sm:$0xff] }
   0x5   :  { %v71_v36 = vld [vmem:[%s2148_s1 + $0x60] sm:$0xff]  ;;  %v72_v37 = vld [vmem:[%s2148_s1 + $0x68] sm:$0xff]  ;;  %v73_v38 = vld [vmem:[%s2148_s1 + $0x70] sm:$0xff] }
   0x6   :  { %v74_v39 = vld [vmem:[%s2148_s1 + $0x78] sm:$0xff]  ;;  %v1104_v40 = vld [vmem:[%s2149_s4] ss:$0 sm:$0xff] }
   0x8   :  { %v75_v0 = vld [vmem:[%s2166_s23] sm:$0xff]  ;;  %v76_v1 = vld [vmem:[%s2166_s23 + $0x8] sm:$0xff]  ;;  %v77_v2 = vld [vmem:[%s2166_s23 + $0x10] sm:$0xff] }
   0x9   :  { %v1422_v3 = vpack.c.bf16 %v76_v1, %v75_v0  ;;  %v78_v4 = vld [vmem:[%s2166_s23 + $0x18] sm:$0xff]  ;;  %v79_v6 = vld [vmem:[%s2166_s23 + $0x20] sm:$0xff]  ;;  %v80_v7 = vld [vmem:[%s2166_s23 + $0x28] sm:$0xff] }
   0xa   :  { %v1426_v5 = vpack.c.bf16 %v78_v4, %v77_v2  ;;  %v1430_v8 = vpack.c.bf16 %v80_v7, %v79_v6  ;;  %v81_v10 = vld [vmem:[%s2166_s23 + $0x30] sm:$0xff]  ;;  %v82_v11 = vld [vmem:[%s2166_s23 + $0x38] sm:$0xff]  ;;  %v83_v13 = vld [vmem:[%s2166_s23 + $0x40] sm:$0xff] }
   0xb   :  { %1423 = vmatprep.subr.bf16.mxu0 %v1422_v3  ;;  %v1434_v12 = vpack.c.bf16 %v82_v11, %v81_v10  ;;  %v84_v14 = vld [vmem:[%s2166_s23 + $0x48] sm:$0xff]  ;;  %v85_v16 = vld [vmem:[%s2166_s23 + $0x50] sm:$0xff]  ;;  %v86_v17 = vld [vmem:[%s2166_s23 + $0x58] sm:$0xff] }
   0xc   :  { %1425 = vmatpush3.bf16.msra.mxu0 %v1422_v3  ;;  %v1438_v15 = vpack.c.bf16 %v84_v14, %v83_v13  ;;  %v1442_v18 = vpack.c.bf16 %v86_v17, %v85_v16  ;;  %v87_v19 = vld [vmem:[%s2166_s23 + $0x60] sm:$0xff]  ;;  %v88_v20 = vld [vmem:[%s2166_s23 + $0x68] sm:$0xff]  ;;  %v89_v22 = vld [vmem:[%s2166_s23 + $0x70] sm:$0xff] }
   0xd   :  { %1427 = vmatprep.subr.bf16.mxu0 %v1426_v5  ;;  %v1446_v21 = vpack.c.bf16 %v88_v20, %v87_v19  ;;  %v90_v23 = vld [vmem:[%s2166_s23 + $0x78] sm:$0xff] }
   0xe   :  { %v1450_v24 = vpack.c.bf16 %v90_v23, %v89_v22 }
  0x10   :  { %1429 = vmatpush3.bf16.msra.mxu0 %v1426_v5 }
  0x11   :  { %1431 = vmatprep.subr.bf16.mxu0 %v1430_v8 }
  0x14   :  { %1433 = vmatpush3.bf16.msra.mxu0 %v1430_v8 }
  0x15   :  { %1435 = vmatprep.subr.bf16.mxu0 %v1434_v12 }
  0x18   :  { %1437 = vmatpush3.bf16.msra.mxu0 %v1434_v12 }
  0x19   :  { %1439 = vmatprep.subr.bf16.mxu0 %v1438_v15 }
  0x1c   :  { %1441 = vmatpush3.bf16.msra.mxu0 %v1438_v15 }
  0x1d   :  { %1443 = vmatprep.subr.bf16.mxu0 %v1442_v18 }
  0x20   :  { %1445 = vmatpush3.bf16.msra.mxu0 %v1442_v18 }
  0x21   :  { %1447 = vmatprep.subr.bf16.mxu0 %v1446_v21 }
  0x24   :  { %1449 = vmatpush3.bf16.msra.mxu0 %v1446_v21 }
  0x25   :  { %1451 = vmatprep.subr.bf16.mxu0 %v1450_v24 }
  0x28   :  { %1453 = vmatpush3.bf16.msra.mxu0 %v1450_v24 }
  0x2b   :  { %1267 = vmatmul.mubr.f32.vlgmr.msra.gmra.mrb[0].mxu0 %v60_v25 }
  0x2c   :  { %1269 = vmatprep.mubr.f32.mxu0 %v61_v26 }
  0x2f   :  { %1270 = vmatmul.mubr.f32.gmra.mrb[2].mxu0 %v62_v27 }
  0x30   :  { %1272 = vmatprep.mubr.f32.mxu0 %v63_v28 }
  0x33   :  { %1273 = vmatmul.mubr.f32.gmra.mrb[4].mxu0 %v64_v29 }
  0x34   :  { %1275 = vmatprep.mubr.f32.mxu0 %v65_v30 }
  0x37   :  { %1276 = vmatmul.mubr.f32.gmra.mrb[6].mxu0 %v66_v31 }
  0x38   :  { %1278 = vmatprep.mubr.f32.mxu0 %v67_v32 }
  0x3b   :  { %1279 = vmatmul.mubr.f32.gmra.mrb[8].mxu0 %v68_v33 }
  0x3c   :  { %1281 = vmatprep.mubr.f32.mxu0 %v69_v34 }
  0x3f   :  { %1282 = vmatmul.mubr.f32.gmra.mrb[10].mxu0 %v70_v35 }
  0x40   :  { %1284 = vmatprep.mubr.f32.mxu0 %v71_v36 }
  0x43   :  { %1285 = vmatmul.mubr.f32.gmra.mrb[12].mxu0 %v72_v37 }
  0x44   :  { %1287 = vmatprep.mubr.f32.mxu0 %v73_v38 }
  0x47   :  { %1288 = vmatmul.mubr.f32.gmra.mrb[14].mxu0 %v74_v39 }
  0xfe   :  { %v1268_v41 = vpop.f32.mrb[0].mxu0 }
  0xff   :  { %v164_v42 = vpop.f32.mrb[1].mxu0  ;;  %v1758_v44 = vadd.f32 %v1268_v41, %v1104_v40 }
 0x100   :  { %v1756_v43 = vadd.f32 %v1104_v40, %v164_v42 }
 0x101   :  { %v249_v52 = vsel %vm57_vm0, %v1758_v44, 0.0 }
 0x102   :  { %v1271_v45 = vpop.f32.mrb[2].mxu0  ;;  %v246_v46 = vsel %vm57_vm0, %v1756_v43, 0.0 }
 0x103   :  { %v174_v47 = vpop.f32.mrb[3].mxu0  ;;  %247 = vadd.xlane.f32.xlu0 %v246_v46  ;;  %v1764_v49 = vadd.f32 %v1271_v45, %v1104_v40 }
 0x104   :  { %v1762_v48 = vadd.f32 %v1104_v40, %v174_v47 }
 0x105   :  { %v255_v57 = vsel %vm57_vm0, %v1764_v49, 0.0 }
 0x106   :  { %v1274_v50 = vpop.f32.mrb[4].mxu0  ;;  %v252_v51 = vsel %vm57_vm0, %v1762_v48, 0.0 }
 0x107   :  { %v184_v53 = vpop.f32.mrb[5].mxu0  ;;  %253 = vadd.xlane.f32.xlu1 %v252_v51  ;;  %250 = vadd.xlane.f32.xlu0 %v249_v52  ;;  %v1772_v55 = vadd.f32 %v1274_v50, %v1104_v40 }
 0x108   :  { %v1770_v54 = vadd.f32 %v1104_v40, %v184_v53 }
 0x109   :  { %v261_v63 = vsel %vm57_vm0, %v1772_v55, 0.0 }
 0x10a   :  { %v1277_v56 = vpop.f32.mrb[6].mxu0  ;;  %v258_v58 = vsel %vm57_vm0, %v1770_v54, 0.0 }
 0x10b   :  { %v194_v59 = vpop.f32.mrb[7].mxu0  ;;  %256 = vadd.xlane.f32.xlu1 %v255_v57  ;;  %259 = vadd.xlane.f32.xlu0 %v258_v58  ;;  %v1780_v61 = vadd.f32 %v1277_v56, %v1104_v40 }
 0x10c   :  { %v1778_v60 = vadd.f32 %v1104_v40, %v194_v59 }
 0x10d   :  { %v267_v5 = vsel %vm57_vm0, %v1780_v61, 0.0 }
 0x10e   :  { %v1280_v62 = vpop.f32.mrb[8].mxu0  ;;  %v264_v0 = vsel %vm57_vm0, %v1778_v60, 0.0 }
 0x10f   :  { %v204_v1 = vpop.f32.mrb[9].mxu0  ;;  %262 = vadd.xlane.f32.xlu1 %v261_v63  ;;  %265 = vadd.xlane.f32.xlu0 %v264_v0  ;;  %v1788_v3 = vadd.f32 %v1280_v62, %v1104_v40 }
 0x110   :  { %v1786_v2 = vadd.f32 %v1104_v40, %v204_v1 }
 0x111   :  { %v273_v11 = vsel %vm57_vm0, %v1788_v3, 0.0 }
 0x112   :  { %v1283_v4 = vpop.f32.mrb[10].mxu0  ;;  %v270_v6 = vsel %vm57_vm0, %v1786_v2, 0.0 }
 0x113   :  { %v214_v7 = vpop.f32.mrb[11].mxu0  ;;  %268 = vadd.xlane.f32.xlu1 %v267_v5  ;;  %271 = vadd.xlane.f32.xlu0 %v270_v6  ;;  %v1796_v9 = vadd.f32 %v1283_v4, %v1104_v40 }
 0x114   :  { %v1794_v8 = vadd.f32 %v1104_v40, %v214_v7 }
 0x115   :  { %v279_v17 = vsel %vm57_vm0, %v1796_v9, 0.0 }
 0x116   :  { %v1286_v10 = vpop.f32.mrb[12].mxu0  ;;  %v276_v12 = vsel %vm57_vm0, %v1794_v8, 0.0 }
 0x117   :  { %v224_v13 = vpop.f32.mrb[13].mxu0  ;;  %274 = vadd.xlane.f32.xlu1 %v273_v11  ;;  %277 = vadd.xlane.f32.xlu0 %v276_v12  ;;  %v1804_v15 = vadd.f32 %v1286_v10, %v1104_v40 }
 0x118   :  { %v1802_v14 = vadd.f32 %v1104_v40, %v224_v13 }
 0x119   :  { %v285_v22 = vsel %vm57_vm0, %v1804_v15, 0.0 }
 0x11a   :  { %v1289_v16 = vpop.f32.mrb[14].mxu0  ;;  %v282_v18 = vsel %vm57_vm0, %v1802_v14, 0.0 }
 0x11b   :  { %v234_v19 = vpop.f32.mrb[15].mxu0  ;;  %280 = vadd.xlane.f32.xlu1 %v279_v17  ;;  %283 = vadd.xlane.f32.xlu0 %v282_v18  ;;  %v1812_v21 = vadd.f32 %v1289_v16, %v1104_v40 }
 0x11c   :  { %v1810_v20 = vadd.f32 %v1104_v40, %v234_v19 }
 0x11d   :  { %v291_v24 = vsel %vm57_vm0, %v1812_v21, 0.0 }
 0x11e   :  { %v288_v23 = vsel %vm57_vm0, %v1810_v20, 0.0 }
 0x11f   :  { %286 = vadd.xlane.f32.xlu1 %v285_v22  ;;  %289 = vadd.xlane.f32.xlu0 %v288_v23 }
 0x123   :  { %292 = vadd.xlane.f32.xlu1 %v291_v24 }
 0x190   :  { %v248_v25 = vpop.xlane.xlu0 %247 }
 0x191   :  { %v295_v26 = vmul.f32 0.015625, %v248_v25 }
 0x193   :  { %v1821_v27 = vsub.f32 %v1756_v43, %v295_v26 }
 0x194   :  { %v254_v28 = vpop.xlane.xlu1 %253  ;;  %v251_v29 = vpop.xlane.xlu0 %250 }
 0x195   :  { %v297_v30 = vmul.f32 0.015625, %v254_v28  ;;  %v296_v31 = vmul.f32 0.015625, %v251_v29  ;;  %v327_v32 = vmul.f32 %v1821_v27, %v1821_v27 }
 0x197   :  { %v1826_v33 = vsub.f32 %v1762_v48, %v297_v30  ;;  %v1829_v34 = vsub.f32 %v1758_v44, %v296_v31  ;;  %v343_v35 = vsel %vm57_vm0, %v327_v32, 0.0 }
 0x198   :  { %v257_v36 = vpop.xlane.xlu1 %256  ;;  %344 = vadd.xlane.f32.xlu0 %v343_v35  ;;  %v260_v37 = vpop.xlane.xlu0 %259 }
 0x199   :  { %v298_v38 = vmul.f32 0.015625, %v257_v36  ;;  %v299_v39 = vmul.f32 0.015625, %v260_v37  ;;  %v329_v40 = vmul.f32 %v1826_v33, %v1826_v33  ;;  %v328_v41 = vmul.f32 %v1829_v34, %v1829_v34 }
 0x19b   :  { %v1837_v42 = vsub.f32 %v1764_v49, %v298_v38  ;;  %v1840_v43 = vsub.f32 %v1770_v54, %v299_v39  ;;  %v349_v44 = vsel %vm57_vm0, %v329_v40, 0.0  ;;  %v346_v45 = vsel %vm57_vm0, %v328_v41, 0.0  ;;  %v515_v38 = vld [vmem:[%s2150_s7] sm:$0xff]  ;;  %v516_v39 = vld [vmem:[%s2150_s7 + $0x8] sm:$0xff] }
 0x19c   :  { %v263_v46 = vpop.xlane.xlu1 %262  ;;  %350 = vadd.xlane.f32.xlu0 %v349_v44  ;;  %347 = vadd.xlane.f32.xlu1 %v346_v45  ;;  %v266_v47 = vpop.xlane.xlu0 %265 }
 0x19d   :  { %v300_v48 = vmul.f32 0.015625, %v263_v46  ;;  %v301_v50 = vmul.f32 0.015625, %v266_v47  ;;  %v330_v51 = vmul.f32 %v1837_v42, %v1837_v42  ;;  %v331_v49 = vmul.f32 %v1840_v43, %v1840_v43 }
 0x19f   :  { %v1849_v52 = vsub.f32 %v1772_v55, %v300_v48  ;;  %v1852_v53 = vsub.f32 %v1778_v60, %v301_v50  ;;  %v352_v54 = vsel %vm57_vm0, %v330_v51, 0.0  ;;  %v355_v56 = vsel %vm57_vm0, %v331_v49, 0.0  ;;  %v517_v48 = vld [vmem:[%s2150_s7 + $0x10] sm:$0xff]  ;;  %v518_v50 = vld [vmem:[%s2150_s7 + $0x18] sm:$0xff] }
 0x1a0   :  { %v269_v57 = vpop.xlane.xlu1 %268  ;;  %353 = vadd.xlane.f32.xlu1 %v352_v54  ;;  %356 = vadd.xlane.f32.xlu0 %v355_v56  ;;  %v272_v58 = vpop.xlane.xlu0 %271  ;;  %v1458_v51 = vpack.c.bf16 %v518_v50, %v517_v48  ;;  %v519_v54 = vld [vmem:[%s2150_s7 + $0x20] sm:$0xff]  ;;  %v520_v56 = vld [vmem:[%s2150_s7 + $0x28] sm:$0xff] }
 0x1a1   :  { %v302_v59 = vmul.f32 0.015625, %v269_v57  ;;  %v303_v62 = vmul.f32 0.015625, %v272_v58  ;;  %v332_v63 = vmul.f32 %v1849_v52, %v1849_v52  ;;  %v333_v55 = vmul.f32 %v1852_v53, %v1852_v53  ;;  %v521_v58 = vld [vmem:[%s2150_s7 + $0x30] sm:$0xff] }
 0x1a2   :  { %v1462_v57 = vpack.c.bf16 %v520_v56, %v519_v54 }
 0x1a3   :  { %v1861_v0 = vsub.f32 %v1780_v61, %v302_v59  ;;  %v1864_v60 = vsub.f32 %v1786_v2, %v303_v62  ;;  %v358_v1 = vsel %vm57_vm0, %v332_v63, 0.0  ;;  %v361_v4 = vsel %vm57_vm0, %v333_v55, 0.0  ;;  %v522_v59 = vld [vmem:[%s2150_s7 + $0x38] sm:$0xff] }
 0x1a4   :  { %v275_v5 = vpop.xlane.xlu1 %274  ;;  %359 = vadd.xlane.f32.xlu1 %v358_v1  ;;  %362 = vadd.xlane.f32.xlu0 %v361_v4  ;;  %v278_v6 = vpop.xlane.xlu0 %277  ;;  %v1466_v62 = vpack.c.bf16 %v522_v59, %v521_v58 }
 0x1a5   :  { %v304_v7 = vmul.f32 0.015625, %v275_v5  ;;  %v305_v10 = vmul.f32 0.015625, %v278_v6  ;;  %v334_v11 = vmul.f32 %v1861_v0, %v1861_v0  ;;  %v335_v61 = vmul.f32 %v1864_v60, %v1864_v60 }
 0x1a7   :  { %v1873_v12 = vsub.f32 %v1788_v3, %v304_v7  ;;  %v1876_v2 = vsub.f32 %v1794_v8, %v305_v10  ;;  %v364_v13 = vsel %vm57_vm0, %v334_v11, 0.0  ;;  %v367_v16 = vsel %vm57_vm0, %v335_v61, 0.0 }
 0x1a8   :  { %v281_v17 = vpop.xlane.xlu1 %280  ;;  %365 = vadd.xlane.f32.xlu1 %v364_v13  ;;  %368 = vadd.xlane.f32.xlu0 %v367_v16  ;;  %v284_v18 = vpop.xlane.xlu0 %283 }
 0x1a9   :  { %v306_v19 = vmul.f32 0.015625, %v281_v17  ;;  %v307_v22 = vmul.f32 0.015625, %v284_v18  ;;  %v336_v23 = vmul.f32 %v1873_v12, %v1873_v12  ;;  %v337_v3 = vmul.f32 %v1876_v2, %v1876_v2 }
 0x1ab   :  { %v1885_v24 = vsub.f32 %v1796_v9, %v306_v19  ;;  %v1888_v8 = vsub.f32 %v1802_v14, %v307_v22  ;;  %v370_v25 = vsel %vm57_vm0, %v336_v23, 0.0  ;;  %v373_v26 = vsel %vm57_vm0, %v337_v3, 0.0 }
 0x1ac   :  { %v287_v28 = vpop.xlane.xlu1 %286  ;;  %371 = vadd.xlane.f32.xlu1 %v370_v25  ;;  %374 = vadd.xlane.f32.xlu0 %v373_v26  ;;  %v290_v29 = vpop.xlane.xlu0 %289 }
 0x1ad   :  { %v308_v30 = vmul.f32 0.015625, %v287_v28  ;;  %v309_v31 = vmul.f32 0.015625, %v290_v29  ;;  %v338_v32 = vmul.f32 %v1885_v24, %v1885_v24  ;;  %v339_v9 = vmul.f32 %v1888_v8, %v1888_v8 }
 0x1af   :  { %v1897_v35 = vsub.f32 %v1804_v15, %v308_v30  ;;  %v1900_v14 = vsub.f32 %v1810_v20, %v309_v31  ;;  %v376_v36 = vsel %vm57_vm0, %v338_v32, 0.0  ;;  %v379_v37 = vsel %vm57_vm0, %v339_v9, 0.0  ;;  %v1943_v30 = vld [vmem:[%s2151_s5] ss:$0 sm:$0xff] }
 0x1b0   :  { %v293_v40 = vpop.xlane.xlu1 %292  ;;  %377 = vadd.xlane.f32.xlu1 %v376_v36  ;;  %380 = vadd.xlane.f32.xlu0 %v379_v37  ;;  %v1454_v15 = vpack.c.bf16 %v516_v39, %v515_v38  ;;  %v1949_v38 = vld [vmem:[%s2152_s6] ss:$0 sm:$0xff] }
 0x1b1   :  { %v310_v41 = vmul.f32 0.015625, %v293_v40  ;;  %v340_v20 = vmul.f32 %v1897_v35, %v1897_v35  ;;  %v341_v44 = vmul.f32 %v1900_v14, %v1900_v14 }
 0x1b2   :  { %1455 = vmatprep.subr.bf16.mxu1 %v1454_v15 }
 0x1b3   :  { %v1915_v45 = vsub.f32 %v1812_v21, %v310_v41  ;;  %v382_v46 = vsel %vm57_vm0, %v340_v20, 0.0  ;;  %v385_v47 = vsel %vm57_vm0, %v341_v44, 0.0  ;;  %1457 = vmatpush3.bf16.msra.mxu1 %v1454_v15 }
 0x1b4   :  { %383 = vadd.xlane.f32.xlu1 %v382_v46  ;;  %386 = vadd.xlane.f32.xlu0 %v385_v47 }
 0x1b5   :  { %v342_v21 = vmul.f32 %v1915_v45, %v1915_v45  ;;  %1459 = vmatprep.subr.bf16.mxu1 %v1458_v51 }
 0x1b7   :  { %v388_v49 = vsel %vm57_vm0, %v342_v21, 0.0  ;;  %1461 = vmatpush3.bf16.msra.mxu1 %v1458_v51 }
 0x1b8   :  { %389 = vadd.xlane.f32.xlu1 %v388_v49  ;;  %1463 = vmatprep.subr.bf16.mxu1 %v1462_v57 }
 0x1bb   :  { %1465 = vmatpush3.bf16.msra.mxu1 %v1462_v57 }
 0x1bc   :  { %1467 = vmatprep.subr.bf16.mxu1 %v1466_v62 }
 0x1bf   :  { %1469 = vmatpush3.bf16.msra.mxu1 %v1466_v62 }
 0x225   :  { %v345_v63 = vpop.xlane.xlu0 %344 }
 0x226   :  { %v391_v55 = vmul.f32 0.015625, %v345_v63 }
 0x228   :  { %v407_v1 = vadd.f32 1e-05, %v391_v55 }
 0x229   :  { %v348_v4 = vpop.xlane.xlu1 %347  ;;  %v351_v5 = vpop.xlane.xlu0 %350 }
 0x22a   :  { %1534 = vrsqrt.f32 %v407_v1  ;;  %v392_v6 = vmul.f32 0.015625, %v348_v4  ;;  %v393_v7 = vmul.f32 0.015625, %v351_v5 }
 0x22c   :  { %v408_v10 = vadd.f32 1e-05, %v392_v6  ;;  %v409_v11 = vadd.f32 1e-05, %v393_v7 }
 0x22d   :  { %v354_v61 = vpop.xlane.xlu1 %353  ;;  %v357_v13 = vpop.xlane.xlu0 %356 }
 0x22e   :  { %1536 = vrsqrt.f32 %v408_v10  ;;  %v394_v16 = vmul.f32 0.015625, %v354_v61  ;;  %v395_v17 = vmul.f32 0.015625, %v357_v13 }
 0x22f   :  { %1538 = vrsqrt.f32 %v409_v11 }
 0x230   :  { %v410_v18 = vadd.f32 1e-05, %v394_v16  ;;  %v411_v19 = vadd.f32 1e-05, %v395_v17 }
 0x231   :  { %v360_v22 = vpop.xlane.xlu1 %359  ;;  %v363_v23 = vpop.xlane.xlu0 %362 }
 0x232   :  { %1540 = vrsqrt.f32 %v410_v18  ;;  %v396_v3 = vmul.f32 0.015625, %v360_v22  ;;  %v397_v25 = vmul.f32 0.015625, %v363_v23 }
 0x233   :  { %1542 = vrsqrt.f32 %v411_v19 }
 0x234   :  { %v1535_v26 = vpop.eup %1534  ;;  %v412_v28 = vadd.f32 1e-05, %v396_v3  ;;  %v413_v29 = vadd.f32 1e-05, %v397_v25 }
 0x235   :  { %v366_v31 = vpop.xlane.xlu1 %365  ;;  %v369_v32 = vpop.xlane.xlu0 %368  ;;  %v439_v9 = vmul.f32 %v1535_v26, %v1821_v27 }
 0x236   :  { %1544 = vrsqrt.f32 %v412_v28  ;;  %v398_v36 = vmul.f32 0.015625, %v366_v31  ;;  %v399_v37 = vmul.f32 0.015625, %v369_v32 }
 0x237   :  { %1546 = vrsqrt.f32 %v413_v29  ;;  %v461_v39 = vmul.f32 %v1943_v30, %v439_v9 }
 0x238   :  { %v1537_v40 = vpop.eup %1536  ;;  %v414_v15 = vadd.f32 1e-05, %v398_v36  ;;  %v415_v41 = vadd.f32 1e-05, %v399_v37 }
 0x239   :  { %v1539_v20 = vpop.eup %1538  ;;  %v372_v44 = vpop.xlane.xlu1 %371  ;;  %v483_v47 = vadd.f32 %v1949_v38, %v461_v39  ;;  %v440_v27 = vmul.f32 %v1537_v40, %v1829_v34 }
 0x23a   :  { %v375_v46 = vpop.xlane.xlu0 %374  ;;  %1548 = vrsqrt.f32 %v414_v15  ;;  %v400_v48 = vmul.f32 0.015625, %v372_v44  ;;  %v441_v51 = vmul.f32 %v1539_v20, %v1826_v33 }
 0x23b   :  { %v401_v50 = vmul.f32 0.015625, %v375_v46  ;;  %1550 = vrsqrt.f32 %v415_v41  ;;  %v499_v21 = vmax.f32 %v483_v47, 0.0  ;;  %v462_v49 = vmul.f32 %v1943_v30, %v440_v27 }
 0x23c   :  { %v1541_v54 = vpop.eup %1540  ;;  %v416_v56 = vadd.f32 1e-05, %v400_v48  ;;  %v463_v58 = vmul.f32 %v1943_v30, %v441_v51 }
 0x23d   :  { %v417_v57 = vadd.f32 1e-05, %v401_v50  ;;  %v1543_v59 = vpop.eup %1542  ;;  %v378_v62 = vpop.xlane.xlu1 %377  ;;  %1306 = vmatprep.mubr.msk.f32.mxu1 %vm57_vm0, %v499_v21  ;;  %v484_v34 = vadd.f32 %v1949_v38, %v462_v49  ;;  %v442_v55 = vmul.f32 %v1541_v54, %v1837_v42 }
 0x23e   :  { %v381_v63 = vpop.xlane.xlu0 %380  ;;  %1552 = vrsqrt.f32 %v416_v56  ;;  %v402_v33 = vmul.f32 0.015625, %v378_v62  ;;  %v485_v4 = vadd.f32 %v1949_v38, %v463_v58  ;;  %v443_v7 = vmul.f32 %v1543_v59, %v1840_v43 }
 0x23f   :  { %v403_v1 = vmul.f32 0.015625, %v381_v63  ;;  %1554 = vrsqrt.f32 %v417_v57  ;;  %v500_v5 = vmax.f32 %v484_v34, 0.0  ;;  %v464_v6 = vmul.f32 %v1943_v30, %v442_v55 }
 0x240   :  { %v1545_v10 = vpop.eup %1544  ;;  %v418_v11 = vadd.f32 1e-05, %v402_v33  ;;  %v501_v13 = vmax.f32 %v485_v4, 0.0  ;;  %v465_v19 = vmul.f32 %v1943_v30, %v443_v7 }
 0x241   :  { %v419_v61 = vadd.f32 1e-05, %v403_v1  ;;  %v1547_v16 = vpop.eup %1546  ;;  %v384_v17 = vpop.xlane.xlu1 %383  ;;  %1307 = vmatmul.mubr.msk.f32.vlgmr.msra.gmra.mrb[0].mxu1 %vm57_vm0, %v500_v5  ;;  %v486_v18 = vadd.f32 %v1949_v38, %v464_v6  ;;  %v444_v22 = vmul.f32 %v1545_v10, %v1849_v52 }
 0x242   :  { %v387_v42 = vpop.xlane.xlu0 %386  ;;  %1556 = vrsqrt.f32 %v418_v11  ;;  %v404_v23 = vmul.f32 0.015625, %v384_v17  ;;  %1309 = vmatprep.mubr.msk.f32.mxu1 %vm57_vm0, %v501_v13  ;;  %v445_v43 = vmul.f32 %v1547_v16, %v1852_v53  ;;  %v487_v26 = vadd.f32 %v1949_v38, %v465_v19 }
 0x243   :  { %v405_v3 = vmul.f32 0.015625, %v387_v42  ;;  %1558 = vrsqrt.f32 %v419_v61  ;;  %v502_v25 = vmax.f32 %v486_v18, 0.0  ;;  %v466_v28 = vmul.f32 %v1943_v30, %v444_v22 }
 0x244   :  { %v1549_v29 = vpop.eup %1548  ;;  %v420_v31 = vadd.f32 1e-05, %v404_v23  ;;  %v467_v9 = vmul.f32 %v1943_v30, %v445_v43  ;;  %v503_v37 = vmax.f32 %v487_v26, 0.0 }
 0x245   :  { %v421_v32 = vadd.f32 1e-05, %v405_v3  ;;  %v1551_v36 = vpop.eup %1550  ;;  %v390_v52 = vpop.xlane.xlu1 %389  ;;  %1310 = vmatmul.mubr.msk.f32.gmra.mrb[2].mxu1 %vm57_vm0, %v502_v25  ;;  %v488_v39 = vadd.f32 %v1949_v38, %v466_v28  ;;  %v446_v53 = vmul.f32 %v1549_v29, %v1861_v0  ;;  %v1568_v3 = vmov 0.0|0.0  }
 0x246   :  { %1560 = vrsqrt.f32 %v420_v31  ;;  %v406_v40 = vmul.f32 0.015625, %v390_v52  ;;  %v489_v15 = vadd.f32 %v1949_v38, %v467_v9  ;;  %v447_v41 = vmul.f32 %v1551_v36, %v1864_v60  ;;  %1312 = vmatprep.mubr.msk.f32.mxu1 %vm57_vm0, %v503_v37  ;;  %1470 = vmatprep.subr.bf16.mxu1 %v1568_v3 }
 0x247   :  { %1562 = vrsqrt.f32 %v421_v32  ;;  %v504_v20 = vmax.f32 %v488_v39, 0.0  ;;  %v468_v44 = vmul.f32 %v1943_v30, %v446_v53  ;;  %1494 = vmatprep.subr.bf16.mxu0 %v1568_v3 }
 0x248   :  { %v1553_v46 = vpop.eup %1552  ;;  %v422_v47 = vadd.f32 1e-05, %v406_v40  ;;  %v505_v27 = vmax.f32 %v489_v15, 0.0  ;;  %v469_v48 = vmul.f32 %v1943_v30, %v447_v41 }
 0x249   :  { %v1555_v50 = vpop.eup %1554  ;;  %1313 = vmatmul.mubr.msk.f32.gmra.mrb[4].mxu1 %vm57_vm0, %v504_v20  ;;  %v490_v0 = vadd.f32 %v1949_v38, %v468_v44  ;;  %v448_v51 = vmul.f32 %v1553_v46, %v1873_v12 }
 0x24a   :  { %1564 = vrsqrt.f32 %v422_v47  ;;  %1315 = vmatprep.mubr.msk.f32.mxu1 %vm57_vm0, %v505_v27  ;;  %v491_v60 = vadd.f32 %v1949_v38, %v469_v48  ;;  %v449_v21 = vmul.f32 %v1555_v50, %v1876_v2 }
 0x24b   :  { %v506_v49 = vmax.f32 %v490_v0, 0.0  ;;  %v470_v54 = vmul.f32 %v1943_v30, %v448_v51 }
 0x24c   :  { %v1557_v56 = vpop.eup %1556  ;;  %v507_v57 = vmax.f32 %v491_v60, 0.0  ;;  %v471_v58 = vmul.f32 %v1943_v30, %v449_v21 }
 0x24d   :  { %v1559_v59 = vpop.eup %1558  ;;  %1316 = vmatmul.mubr.msk.f32.gmra.mrb[6].mxu1 %vm57_vm0, %v506_v49  ;;  %v492_v62 = vadd.f32 %v1949_v38, %v470_v54  ;;  %v450_v12 = vmul.f32 %v1557_v56, %v1885_v24 }
 0x24e   :  { %1318 = vmatprep.mubr.msk.f32.mxu1 %vm57_vm0, %v507_v57  ;;  %v493_v63 = vadd.f32 %v1949_v38, %v471_v58  ;;  %v451_v2 = vmul.f32 %v1559_v59, %v1888_v8 }
 0x24f   :  { %v508_v34 = vmax.f32 %v492_v62, 0.0  ;;  %v472_v55 = vmul.f32 %v1943_v30, %v450_v12  ;;  %v723_v62 = vlaneseq }
 0x250   :  { %v1561_v33 = vpop.eup %1560  ;;  %v509_v1 = vmax.f32 %v493_v63, 0.0  ;;  %v473_v4 = vmul.f32 %v1943_v30, %v451_v2 }
 0x251   :  { %v1563_v5 = vpop.eup %1562  ;;  %1319 = vmatmul.mubr.msk.f32.gmra.mrb[8].mxu1 %vm57_vm0, %v508_v34  ;;  %v494_v6 = vadd.f32 %v1949_v38, %v472_v55  ;;  %v452_v24 = vmul.f32 %v1561_v33, %v1897_v35  ;;  %v724_v33 = vshrl.u32 %v723_v62, 7 }
 0x252   :  { %1321 = vmatprep.mubr.msk.f32.mxu1 %vm57_vm0, %v509_v1  ;;  %v495_v7 = vadd.f32 %v1949_v38, %v473_v4  ;;  %v453_v8 = vmul.f32 %v1563_v5, %v1900_v14  ;;  %v1124_v1 = vld [vmem:[%s2154_s0] ss:$0 sm:$0xff]  ;;  %v1571_v5 = vmov 1.0  }
 0x253   :  { %v510_v10 = vmax.f32 %v494_v6, 0.0  ;;  %v474_v11 = vmul.f32 %v1943_v30, %v452_v24  ;;  %vm730_vm2 = vcmp.eq.s32.totalorder %v1124_v1, %v724_v33  ;;  %v1131_v1 = vld [vmem:[%s2161_s13] ss:$0 sm:$0xff] }
 0x254   :  { %v1565_v61 = vpop.eup %1564  ;;  %v511_v13 = vmax.f32 %v495_v7, 0.0  ;;  %v475_v16 = vmul.f32 %v1943_v30, %v453_v8 }
 0x255   :  { %1322 = vmatmul.mubr.msk.f32.gmra.mrb[10].mxu1 %vm57_vm0, %v510_v10  ;;  %v496_v17 = vadd.f32 %v1949_v38, %v474_v11  ;;  %v454_v42 = vmul.f32 %v1565_v61, %v1915_v45  ;;  %v1570_v45 = vmov 0.0   ;;  %v848_v61 = vld [vmem:[%s2155_s12] sm:$0xff] }
 0x256   :  { %1324 = vmatprep.mubr.msk.f32.mxu1 %vm57_vm0, %v511_v13  ;;  %v497_v35 = vadd.f32 %v1949_v38, %v475_v16  ;;  %58 = vst.msk [vmem:[#allocation2] sm:$0xff] %vm57_vm0, %v1570_v45  ;;  %1381 = vmatprep.mubr.msk.f32.mxu0 %vm1569_vm1, %v1570_v45  ;;  %v849_v13 = vld [vmem:[%s2155_s12 + $0x8] sm:$0xff]  ;;  %v850_v16 = vld [vmem:[%s2155_s12 + $0x10] sm:$0xff] }
 0x257   :  { %v512_v18 = vmax.f32 %v496_v17, 0.0  ;;  %v476_v14 = vmul.f32 %v1943_v30, %v454_v42  ;;  %v1107_v30 = vld [vmem:[%s2153_s8] ss:$0 sm:$0xff]  ;;  %v1495_v17 = vpack.c.bf16 %v849_v13, %v848_v61  ;;  %v851_v42 = vld [vmem:[%s2155_s12 + $0x18] sm:$0xff] }
 0x258   :  { %v513_v19 = vmax.f32 %v497_v35, 0.0  ;;  %v1498_v35 = vpack.c.bf16 %v851_v42, %v850_v16 }
 0x259   :  { %1325 = vmatmul.mubr.msk.f32.gmra.mrb[12].mxu1 %vm57_vm0, %v512_v18  ;;  %v498_v22 = vadd.f32 %v1949_v38, %v476_v14  ;;  %1496 = vmatpush3.bf16.msra.mxu0 %v1495_v17 }
 0x25a   :  { %1327 = vmatprep.mubr.msk.f32.mxu1 %vm57_vm0, %v513_v19  ;;  %1497 = vmatprep.subr.bf16.mxu0 %v1568_v3 }
 0x25b   :  { %v514_v23 = vmax.f32 %v498_v22, 0.0 }
 0x25d   :  { %1328 = vmatmul.mubr.msk.f32.gmra.mrb[14].mxu1 %vm57_vm0, %v514_v23  ;;  %v733_v6 = vld [vmem:[#allocation2] sm:$0xff]  ;;  %1499 = vmatpush3.bf16.msra.mxu0 %v1498_v35 }
 0x25e   :  { %1362 = vmatprep.mubr.msk.f32.mxu1 %vm1569_vm1, %v1570_v45  ;;  %1500 = vmatprep.subr.bf16.mxu0 %v1568_v3 }
 0x314   :  { %v1308_v38 = vpop.f32.mrb[0].mxu1 }
 0x315   :  { %v650_v43 = vadd.f32 %v1308_v38, %v1107_v30  ;;  %v644_v25 = vpop.f32.mrb[1].mxu1  ;;  %v840_v38 = vld [vmem:[%s2156_s11 + $0x8] sm:$0xff] }
 0x316   :  { %v645_v26 = vadd.f32 %v1107_v30, %v644_v25  ;;  %v841_v25 = vld [vmem:[%s2156_s11 + $0x10] sm:$0xff] }
 0x318   :  { %v1471_v28 = vpack.c.bf16 %v650_v43, %v645_v26  ;;  %v1311_v29 = vpop.f32.mrb[2].mxu1  ;;  %v842_v26 = vld [vmem:[%s2156_s11 + $0x18] sm:$0xff] }
 0x319   :  { %v660_v31 = vadd.f32 %v1311_v29, %v1107_v30  ;;  %v654_v32 = vpop.f32.mrb[3].mxu1  ;;  %v852_v29 = vld [vmem:[%s2155_s12 + $0x20] sm:$0xff] }
 0x31a   :  { %v655_v9 = vadd.f32 %v1107_v30, %v654_v32  ;;  %1472 = vmatpush3.bf16.msra.mxu1 %v1471_v28  ;;  %v1510_v28 = vpack.c.bf16 %v842_v26, %v841_v25 }
 0x31b   :  { %1473 = vmatprep.subr.bf16.mxu1 %v1568_v3 }
 0x31c   :  { %v1474_v36 = vpack.c.bf16 %v660_v31, %v655_v9  ;;  %v1314_v52 = vpop.f32.mrb[4].mxu1  ;;  %v853_v31 = vld [vmem:[%s2155_s12 + $0x28] sm:$0xff]  ;;  %v843_v9 = vld [vmem:[%s2156_s11 + $0x20] sm:$0xff] }
 0x31d   :  { %v670_v37 = vadd.f32 %v1314_v52, %v1107_v30  ;;  %v664_v39 = vpop.f32.mrb[5].mxu1  ;;  %v1501_v32 = vpack.c.bf16 %v853_v31, %v852_v29 }
 0x31e   :  { %v665_v53 = vadd.f32 %v1107_v30, %v664_v39  ;;  %1475 = vmatpush3.bf16.msra.mxu1 %v1474_v36  ;;  %v844_v36 = vld [vmem:[%s2156_s11 + $0x28] sm:$0xff]  ;;  %v855_v39 = vld [vmem:[%s2155_s12 + $0x38] sm:$0xff] }
 0x31f   :  { %1476 = vmatprep.subr.bf16.mxu1 %v1568_v3  ;;  %v1513_v52 = vpack.c.bf16 %v844_v36, %v843_v9  ;;  %1502 = vmatpush3.bf16.msra.mxu0 %v1501_v32 }
 0x320   :  { %v1477_v40 = vpack.c.bf16 %v670_v37, %v665_v53  ;;  %v1317_v15 = vpop.f32.mrb[6].mxu1  ;;  %1503 = vmatprep.subr.bf16.mxu0 %v1568_v3  ;;  %v854_v37 = vld [vmem:[%s2155_s12 + $0x30] sm:$0xff] }
 0x321   :  { %v680_v41 = vadd.f32 %v1317_v15, %v1107_v30  ;;  %v674_v20 = vpop.f32.mrb[7].mxu1  ;;  %v1504_v53 = vpack.c.bf16 %v855_v39, %v854_v37  ;;  %v846_v15 = vld [vmem:[%s2156_s11 + $0x38] sm:$0xff] }
 0x322   :  { %v675_v44 = vadd.f32 %v1107_v30, %v674_v20  ;;  %1478 = vmatpush3.bf16.msra.mxu1 %v1477_v40  ;;  %v845_v40 = vld [vmem:[%s2156_s11 + $0x30] sm:$0xff]  ;;  %v847_v20 = vld [vmem:[%s2157_s2] sm:$0xff] }
 0x323   :  { %1479 = vmatprep.subr.bf16.mxu1 %v1568_v3  ;;  %1505 = vmatpush3.bf16.msra.mxu0 %v1504_v53 }
 0x324   :  { %v1480_v46 = vpack.c.bf16 %v680_v41, %v675_v44  ;;  %v1320_v47 = vpop.f32.mrb[8].mxu1  ;;  %v1516_v41 = vpack.c.bf16 %v846_v15, %v845_v40  ;;  %1518 = vmatprep.subr.bf16.mxu0 %v1568_v3  ;;  %v1011_v44 = vld [vmem:[%s2158_s14] sm:$0xff] }
 0x325   :  { %v690_v27 = vadd.f32 %v1320_v47, %v1107_v30  ;;  %v684_v48 = vpop.f32.mrb[9].mxu1  ;;  %v1013_v47 = vld [vmem:[%s2158_s14 + $0x10] sm:$0xff] }
 0x326   :  { %v685_v50 = vadd.f32 %v1107_v30, %v684_v48  ;;  %1481 = vmatpush3.bf16.msra.mxu1 %v1480_v46  ;;  %1382 = vmatmul.mubr.msk.f32.vlgmr.msra.gmra.mrb[16].mxu0 %vm57_vm0, %v847_v20  ;;  %v1012_v46 = vld [vmem:[%s2158_s14 + $0x8] sm:$0xff]  ;;  %v1014_v48 = vld [vmem:[%s2158_s14 + $0x18] sm:$0xff] }
 0x327   :  { %1482 = vmatprep.subr.bf16.mxu1 %v1568_v3  ;;  %1419 = vmatprep.mubr.msk.f32.mxu0 %vm1569_vm1, %v1570_v45 }
 0x328   :  { %v1483_v0 = vpack.c.bf16 %v690_v27, %v685_v50  ;;  %v1323_v51 = vpop.f32.mrb[10].mxu1  ;;  %v1519_v27 = vpack.c.bf16 %v1012_v46, %v1011_v44  ;;  %v1522_v50 = vpack.c.bf16 %v1014_v48, %v1013_v47 }
 0x329   :  { %v700_v60 = vadd.f32 %v1323_v51, %v1107_v30  ;;  %v694_v21 = vpop.f32.mrb[11].mxu1 }
 0x32a   :  { %v695_v49 = vadd.f32 %v1107_v30, %v694_v21  ;;  %1484 = vmatpush3.bf16.msra.mxu1 %v1483_v0  ;;  %1520 = vmatpush3.bf16.msra.mxu0 %v1519_v27 }
 0x32b   :  { %1485 = vmatprep.subr.bf16.mxu1 %v1568_v3  ;;  %1521 = vmatprep.subr.bf16.mxu0 %v1568_v3 }
 0x32c   :  { %v1486_v54 = vpack.c.bf16 %v700_v60, %v695_v49  ;;  %v1326_v56 = vpop.f32.mrb[12].mxu1  ;;  %v1127_v49 = vld [vmem:[%s2159_s9] ss:$0 sm:$0xff] }
 0x32d   :  { %v710_v57 = vadd.f32 %v1326_v56, %v1107_v30  ;;  %v704_v58 = vpop.f32.mrb[13].mxu1 }
 0x32e   :  { %v705_v59 = vadd.f32 %v1107_v30, %v704_v58  ;;  %1487 = vmatpush3.bf16.msra.mxu1 %v1486_v54  ;;  %1523 = vmatpush3.bf16.msra.mxu0 %v1522_v50  ;;  %v1015_v58 = vld [vmem:[%s2158_s14 + $0x20] sm:$0xff] }
 0x32f   :  { %1488 = vmatprep.subr.bf16.mxu1 %v1568_v3  ;;  %1524 = vmatprep.subr.bf16.mxu0 %v1568_v3 }
 0x330   :  { %v1489_v12 = vpack.c.bf16 %v710_v57, %v705_v59  ;;  %v1329_v63 = vpop.f32.mrb[14].mxu1  ;;  %v1016_v59 = vld [vmem:[%s2158_s14 + $0x28] sm:$0xff] }
 0x331   :  { %v720_v2 = vadd.f32 %v1329_v63, %v1107_v30  ;;  %v714_v34 = vpop.f32.mrb[15].mxu1  ;;  %v1525_v62 = vpack.c.bf16 %v1016_v59, %v1015_v58 }
 0x332   :  { %v715_v55 = vadd.f32 %v1107_v30, %v714_v34  ;;  %1490 = vmatpush3.bf16.msra.mxu1 %v1489_v12  ;;  %v839_v30 = vld [vmem:[%s2156_s11] sm:$0xff]  ;;  %v1018_v34 = vld [vmem:[%s2158_s14 + $0x38] sm:$0xff] }
 0x333   :  { %1491 = vmatprep.subr.bf16.mxu1 %v1568_v3  ;;  %v1507_v43 = vpack.c.bf16 %v840_v38, %v839_v30  ;;  %1526 = vmatpush3.bf16.msra.mxu0 %v1525_v62 }
 0x334   :  { %v1492_v4 = vpack.c.bf16 %v720_v2, %v715_v55  ;;  %1527 = vmatprep.subr.bf16.mxu0 %v1568_v3  ;;  %v1017_v2 = vld [vmem:[%s2158_s14 + $0x30] sm:$0xff] }
 0x335   :  { %v1528_v55 = vpack.c.bf16 %v1018_v34, %v1017_v2 }
 0x336   :  { %1493 = vmatpush3.bf16.msra.mxu1 %v1492_v4 }
 0x337   :  { %1506 = vmatprep.subr.bf16.mxu1 %v1568_v3  ;;  %1529 = vmatpush3.bf16.msra.mxu0 %v1528_v55 }
 0x339   :  { %1363 = vmatmul.mubr.msk.f32.vlgmr.msra.gmra.mrb[16].mxu1 %vm730_vm2, %v1571_v5 }
 0x33a   :  { %1400 = vmatprep.mubr.msk.f32.mxu1 %vm1569_vm1, %v1570_v45  ;;  %1508 = vmatpush3.bf16.msra.mxu1 %v1507_v43  ;;  %v1128_v45 = vld [vmem:[%s2160_s10] ss:$0 sm:$0xff] }
 0x33b   :  { %1509 = vmatprep.subr.bf16.mxu1 %v1568_v3 }
 0x33e   :  { %1511 = vmatpush3.bf16.msra.mxu1 %v1510_v28 }
 0x33f   :  { %1512 = vmatprep.subr.bf16.mxu1 %v1568_v3 }
 0x342   :  { %1514 = vmatpush3.bf16.msra.mxu1 %v1513_v52 }
 0x343   :  { %1515 = vmatprep.subr.bf16.mxu1 %v1568_v3  ;;  %v1132_v3 = vld [vmem:[%s2162_s15] ss:$0 sm:$0xff] }
 0x346   :  { %1517 = vmatpush3.bf16.msra.mxu1 %v1516_v41 }
 0x3f9   :  { %v925_v12 = vpop.f32.mrb[16].mxu0 }
 0x3fa   :  { %v1383_v63 = vpop.f32.mrb[17].mxu0 }
 0x40c   :  { %v800_v24 = vpop.f32.mrb[16].mxu1 }
 0x40d   :  { %v804_v7 = vadd.f32 %v800_v24, %v733_v6  ;;  %v1364_v8 = vpop.f32.mrb[17].mxu1 }
 0x40f   :  { %805 = vst.msk [vmem:[#allocation2] sm:$0xff] %vm57_vm0, %v804_v7 }
 0x416   :  { %v809_v10 = vld [vmem:[#allocation2] sm:$0xff] }
 0x417   :  { %v812_v11 = vsel %vm57_vm0, %v809_v10, 0.0 }
 0x418   :  { %813 = vadd.xlane.f32.xlu0 %v812_v11 }
 0x4a5   :  { %v814_v18 = vpop.xlane.xlu0 %813 }
 0x4a6   :  { %v815_v14 = vmul.f32 0.015625, %v814_v18 }
 0x4a8   :  { %v816_v19 = vsub.f32 %v809_v10, %v815_v14 }
 0x4aa   :  { %v817_v22 = vmul.f32 %v816_v19, %v816_v19 }
 0x4ac   :  { %v818_v23 = vsel %vm57_vm0, %v817_v22, 0.0 }
 0x4ad   :  { %819 = vadd.xlane.f32.xlu1 %v818_v23 }
 0x53a   :  { %v820_v0 = vpop.xlane.xlu1 %819 }
 0x53b   :  { %v821_v51 = vmul.f32 0.015625, %v820_v0 }
 0x53d   :  { %v822_v60 = vadd.f32 1e-05, %v821_v51 }
 0x53f   :  { %1566 = vrsqrt.f32 %v822_v60 }
 0x549   :  { %v1567_v21 = vpop.eup %1566 }
 0x54a   :  { %v824_v54 = vmul.f32 %v1567_v21, %v816_v19 }
 0x54c   :  { %v831_v56 = vmul.f32 %v1127_v49, %v824_v54 }
 0x54e   :  { %v838_v57 = vadd.f32 %v1128_v45, %v831_v56 }
 0x550   :  { %1401 = vmatmul.mubr.msk.f32.vlgmr.msra.gmra.mrb[18].mxu1 %vm57_vm0, %v838_v57 }
 0x623   :  { %v998_v33 = vpop.f32.mrb[18].mxu1 }
 0x624   :  { %v999_v4 = vadd.f32 %v998_v33, %v925_v12  ;;  %v1402_v5 = vpop.f32.mrb[19].mxu1 }
 0x626   :  { %v1009_v6 = vadd.f32 %v1131_v1, %v999_v4 }
 0x628   :  { %v1010_v24 = vmax.f32 %v1009_v6, 0.0 }
 0x62a   :  { %1420 = vmatmul.mubr.msk.f32.vlgmr.msra.gmra.mrb[18].mxu0 %vm57_vm0, %v1010_v24 }
 0x6fd   :  { %v1095_v7 = vpop.f32.mrb[18].mxu0 }
 0x6fe   :  { %v1096_v8 = vadd.f32 %v1132_v3, %v1095_v7  ;;  %v1421_v10 = vpop.f32.mrb[19].mxu0 }
 0x700   :  { %1099 = vst.msk [vmem:[%s2163_s16] sm:$0xff] %vm57_vm0, %v1096_v8 }

// kernel: forward.15
= control target key start
LH: loop header
LB: loop body
LE: loop exit
PB: predicated region body
PF: predicated region fallthrough
CT: control target
= control target key end

     0   :  { %s424_s23 = smov 64   ;;  %v425_v1 = vmov 0.0|0.0   ;;  %vm426_vm0 = vmmov 0   ;;  %v427_v7 = vmov 0.0   ;;  %s604_s0 = inlined_call_operand.vmem [shape: f32[4,128], index: 0, kind: input, shape index: {}]   ;;  %s605_s1 = inlined_call_operand.vmem [shape: f32[1,128], index: 1, kind: input, shape index: {}]   ;;  %s606_s2 = inlined_call_operand.vmem [shape: f32[1,128], index: 2, kind: input, shape index: {}]   ;;  %s607_s3 = inlined_call_operand.vmem [shape: f32[128,128], index: 3, kind: input, shape index: {}]   ;;  %s608_s4 = inlined_call_operand.vmem [shape: f32[1,128], index: 4, kind: input, shape index: {}]   ;;  %s609_s5 = inlined_call_operand.vmem [shape: f32[128,128], index: 5, kind: input, shape index: {}]   ;;  %s610_s6 = inlined_call_operand.hbm [shape: f32[4,128], index: 6, kind: output, shape index: {}]  }
   0x1   :  { %v467_v0 = vld [vmem:[%s604_s0] sm:$0xf]  ;;  %347 = vmatprep.subr.bf16.mxu0 %v425_v1  ;;  %v46_v3 = vld [vmem:[%s607_s3 + $0x8] sm:$0xff]  ;;  %v47_v4 = vld [vmem:[%s607_s3 + $0x10] sm:$0xff]  ;;  %309 = vmatprep.mubr.msk.f32.mxu0 %vm426_vm0, %v427_v7 }
   0x2   :  { %25 = vrot.lane.b32.xlu0 %v467_v0, %s424_s23  ;;  %v45_v2 = vld [vmem:[%s607_s3] sm:$0xff]  ;;  %v48_v6 = vld [vmem:[%s607_s3 + $0x18] sm:$0xff]  ;;  %371 = vmatprep.subr.bf16.mxu1 %v425_v1  ;;  %v50_v10 = vld [vmem:[%s607_s3 + $0x28] sm:$0xff] }
   0x3   :  { %v348_v5 = vpack.c.bf16 %v46_v3, %v45_v2  ;;  %344 = vmatprep.mubr.msk.f32.mxu1 %vm426_vm0, %v427_v7  ;;  %v351_v8 = vpack.c.bf16 %v48_v6, %v47_v4  ;;  %v49_v9 = vld [vmem:[%s607_s3 + $0x20] sm:$0xff]  ;;  %v140_v12 = vld [vmem:[%s609_s5 + $0x8] sm:$0xff]  ;;  %v141_v13 = vld [vmem:[%s609_s5 + $0x10] sm:$0xff] }
   0x4   :  { %v139_v11 = vld [vmem:[%s609_s5] sm:$0xff]  ;;  %v142_v14 = vld [vmem:[%s609_s5 + $0x18] sm:$0xff]  ;;  %v354_v15 = vpack.c.bf16 %v50_v10, %v49_v9  ;;  %v51_v17 = vld [vmem:[%s607_s3 + $0x30] sm:$0xff] }
   0x5   :  { %349 = vmatpush3.bf16.msra.mxu0 %v348_v5  ;;  %v372_v16 = vpack.c.bf16 %v140_v12, %v139_v11  ;;  %v52_v18 = vld [vmem:[%s607_s3 + $0x38] sm:$0xff]  ;;  %v375_v19 = vpack.c.bf16 %v142_v14, %v141_v13  ;;  %v143_v20 = vld [vmem:[%s609_s5 + $0x20] sm:$0xff]  ;;  %v144_v21 = vld [vmem:[%s609_s5 + $0x28] sm:$0xff] }
   0x6   :  { %350 = vmatprep.subr.bf16.mxu0 %v425_v1 }
   0x7   :  { %373 = vmatpush3.bf16.msra.mxu1 %v372_v16 }
   0x8   :  { %374 = vmatprep.subr.bf16.mxu1 %v425_v1 }
   0x9   :  { %352 = vmatpush3.bf16.msra.mxu0 %v351_v8 }
   0xa   :  { %353 = vmatprep.subr.bf16.mxu0 %v425_v1 }
   0xb   :  { %11 = vsyncpa [#allocation3], 0  ;;  %v357_v22 = vpack.c.bf16 %v52_v18, %v51_v17  ;;  %v53_v23 = vld [vmem:[%s607_s3 + $0x40] sm:$0xff]  ;;  %v54_v24 = vld [vmem:[%s607_s3 + $0x48] sm:$0xff]  ;;  %376 = vmatpush3.bf16.msra.mxu1 %v375_v19  ;;  %v378_v25 = vpack.c.bf16 %v144_v21, %v143_v20 }
   0xc   :  { %377 = vmatprep.subr.bf16.mxu1 %v425_v1  ;;  %v145_v26 = vld [vmem:[%s609_s5 + $0x30] sm:$0xff]  ;;  %v146_v27 = vld [vmem:[%s609_s5 + $0x38] sm:$0xff]  ;;  %v360_v28 = vpack.c.bf16 %v54_v24, %v53_v23  ;;  %v147_v32 = vld [vmem:[%s609_s5 + $0x40] sm:$0xff] }
   0xd   :  { %355 = vmatpush3.bf16.msra.mxu0 %v354_v15  ;;  %v55_v29 = vld [vmem:[%s607_s3 + $0x50] sm:$0xff]  ;;  %v56_v30 = vld [vmem:[%s607_s3 + $0x58] sm:$0xff]  ;;  %v381_v31 = vpack.c.bf16 %v146_v27, %v145_v26  ;;  %v148_v33 = vld [vmem:[%s609_s5 + $0x48] sm:$0xff] }
   0xe   :  { %356 = vmatprep.subr.bf16.mxu0 %v425_v1  ;;  %v363_v34 = vpack.c.bf16 %v56_v30, %v55_v29  ;;  %v57_v35 = vld [vmem:[%s607_s3 + $0x60] sm:$0xff]  ;;  %v58_v36 = vld [vmem:[%s607_s3 + $0x68] sm:$0xff]  ;;  %v384_v37 = vpack.c.bf16 %v148_v33, %v147_v32  ;;  %v149_v38 = vld [vmem:[%s609_s5 + $0x50] sm:$0xff] }
   0xf   :  { %379 = vmatpush3.bf16.msra.mxu1 %v378_v25  ;;  %v150_v39 = vld [vmem:[%s609_s5 + $0x58] sm:$0xff]  ;;  %v366_v40 = vpack.c.bf16 %v58_v36, %v57_v35  ;;  %v59_v41 = vld [vmem:[%s607_s3 + $0x70] sm:$0xff]  ;;  %v151_v44 = vld [vmem:[%s609_s5 + $0x60] sm:$0xff] }
  0x10   :  { %380 = vmatprep.subr.bf16.mxu1 %v425_v1  ;;  %v60_v42 = vld [vmem:[%s607_s3 + $0x78] sm:$0xff]  ;;  %v387_v43 = vpack.c.bf16 %v150_v39, %v149_v38  ;;  %v152_v45 = vld [vmem:[%s609_s5 + $0x68] sm:$0xff]  ;;  %v240_v48 = vld [vmem:[%s605_s1] ss:$0 sm:$0xff] }
  0x11   :  { %358 = vmatpush3.bf16.msra.mxu0 %v357_v22  ;;  %v369_v46 = vpack.c.bf16 %v60_v42, %v59_v41  ;;  %v390_v47 = vpack.c.bf16 %v152_v45, %v151_v44  ;;  %v241_v49 = vld [vmem:[%s606_s2] ss:$0 sm:$0xff]  ;;  %v34_v50 = vmul.f32 %v240_v48, %v467_v0  ;;  %v153_v55 = vld [vmem:[%s609_s5 + $0x70] sm:$0xff]  ;;  %v154_v56 = vld [vmem:[%s609_s5 + $0x78] sm:$0xff]  ;;  %s428_s2 = smov [#allocation2]  }
  0x12   :  { %359 = vmatprep.subr.bf16.mxu0 %v425_v1  ;;  %v393_v57 = vpack.c.bf16 %v154_v56, %v153_v55  ;;  %v242_v58 = vld [vmem:[%s608_s4] ss:$0 sm:$0xff]  ;;  %s232_s17 = sshll.u32 %s428_s2, 4  ;;  %s233_s17 = int_to_ptr.vmem [resolvable:$true] %s232_s17 }
  0x13   :  { %382 = vmatpush3.bf16.msra.mxu1 %v381_v31  ;;  %s400_s18 = scalar_lea.vmem %s233_s17, 64  ;;  %p405_p1 = scmp.lt.s32.totalorder %s233_s17, %s233_s17 }
  0x14   :  { %383 = vmatprep.subr.bf16.mxu1 %v425_v1  ;;  %p401_p0 = scmp.ne.s32.totalorder %s233_s17, %s400_s18  ;;  %p406_p2 = scmp.lt.s32.totalorder %s400_s18, %s400_s18 }
  0x15   :  { %361 = vmatpush3.bf16.msra.mxu0 %v360_v28 }
  0x16   :  { %362 = vmatprep.subr.bf16.mxu0 %v425_v1  ;;  %p407_p3 = por %p406_p2, %p405_p1 }
  0x17   :  { %385 = vmatpush3.bf16.msra.mxu1 %v384_v37 }
  0x18   :  { %386 = vmatprep.subr.bf16.mxu1 %v425_v1  ;;  %p408_p4 = pnand %p407_p3, %p401_p0 }
  0x19   :  { %364 = vmatpush3.bf16.msra.mxu0 %v363_v34 }
  0x1a   :  { %365 = vmatprep.subr.bf16.mxu0 %v425_v1 }
  0x1b   :  { %388 = vmatpush3.bf16.msra.mxu1 %v387_v43 }
  0x1c   :  { %389 = vmatprep.subr.bf16.mxu1 %v425_v1 }
  0x1d   :  { %367 = vmatpush3.bf16.msra.mxu0 %v366_v40 }
  0x1e   :  { %368 = vmatprep.subr.bf16.mxu0 %v425_v1 }
  0x1f   :  { %391 = vmatpush3.bf16.msra.mxu1 %v390_v47 }
  0x20   :  { %392 = vmatprep.subr.bf16.mxu1 %v425_v1 }
  0x21   :  { %370 = vmatpush3.bf16.msra.mxu0 %v369_v46 }
  0x23   :  { %394 = vmatpush3.bf16.msra.mxu1 %v393_v57 }
  0x74   :  { %v26_v51 = vpop.permute.xlu0 %25 }
  0x75   :  { %v42_v52 = vmul.f32 %v241_v49, %v26_v51 }
  0x77   :  { %v43_v53 = vadd.f32 %v42_v52, %v34_v50 }
  0x79   :  { %v44_v54 = vmax.f32 %v43_v53, 0.0 }
  0x7b   :  { %310 = vmatmul.mubr.f32.vlgmr.msra.gmra.mrb[0].mxu0 %v44_v54 }
 0x14e   :  { %v134_v59 = vpop.f32.mrb[0].mxu0 }
 0x14f   :  { %v135_v60 = vadd.f32 %v242_v58, %v134_v59  ;;  %v311_v61 = vpop.f32.mrb[1].mxu0 }
 0x151   :  { %v138_v62 = vmax.f32 %v135_v60, 0.0 }
 0x153   :  { %345 = vmatmul.mubr.f32.vlgmr.msra.gmra.mrb[0].mxu1 %v138_v62 }
 0x226   :  { %v221_v63 = vpop.f32.mrb[0].mxu1 }
 0x227   :  { %225 = vst [vmem:[#allocation2] sm:$0xf] %v221_v63  ;;  %v346_v0 = vpop.f32.mrb[1].mxu1 }
 0x228   :  { %411 = shalt.err (!%p408_p4)
}
 0x229   :  { %s412_s19 = scalar_lea.hbm %s610_s6, 64 }
 0x22a   :  { %p413_p5 = scmp.ne.s32.totalorder %s610_s6, %s412_s19  ;;  %p416_p6 = scmp.lt.u32.totalorder %s412_s19, %s610_s6 }
 0x22c   :  { %p418_p7 = pnand %p416_p6, %p413_p5 }
 0x22e   :  { %421 = shalt.err (!%p418_p7)
}
 0x22f   :  { %235 = dma.vmem_to_hbm [thread:$0]  %s233_s17, 64, %s610_s6, [#allocation3]  }
 0x230   :  { %422 = dma.done.wait [#allocation3], 64  }
 0x231   :  { %423 = vsyncadd [#allocation3], 4294967232 }
 0x232   :  { %239 = vsyncpa [#allocation3], 1 }

</bundles_post_ra>
